<compile_context>
chip_gen: v5e
topology: v5e:2x2
jax: 0.10.0
libtpu: 0.0.40
codegen_flags: <defaults>
</compile_context>

<pallas_src>
import jax
import jax.numpy as jnp
from jax.experimental import pallas as pl
from jax.experimental.pallas import tpu as pltpu


def _disc_lstm_kernel(x_ref, w1_ref, b1_ref, wih_ref, whh_ref, bg_ref,
                      w2_ref, b2_ref, o_ref, gx_sc, logit_sc):
    """One batch tile, time-major.

    x_ref:   (T, Bt, F)  input tile (time-major)
    w1_ref:  (F, H), b1_ref: (1, H)                       -- fc1
    wih_ref: (H, 4H), whh_ref: (H, 4H), bg_ref: (1, 4H)   -- LSTM (b_ih+b_hh folded)
    w2_ref:  (1, H)                                       -- fc2 weight (row vector)
    b2_ref:  (1, 1) in SMEM                               -- fc2 bias (scalar)
    o_ref:   (T, Bt)     lane-dense sigmoid output
    gx_sc:   (T, Bt, 4H) VMEM scratch: hoisted input-to-gate projection
    logit_sc:(T, Bt)     VMEM scratch: per-step fc2 logits
    """
    T, Bt, F = x_ref.shape
    H = w1_ref.shape[1]
    f32 = jnp.float32

    # ---- fc1 + input-to-gate projection, hoisted out of the recurrence ----
    # (T, Bt, F) -> (T*Bt, F) is a free leading-dim merge (Bt is 8-aligned).
    x2 = x_ref[...].reshape(T * Bt, F)
    z1 = jnp.dot(x2.astype(w1_ref.dtype), w1_ref[...],
                 preferred_element_type=f32) + b1_ref[...]
    z1 = jnp.where(z1 > 0, z1, 0.1 * z1)                        # LeakyReLU(0.1)
    gx = jnp.dot(z1.astype(wih_ref.dtype), wih_ref[...],
                 preferred_element_type=f32) + bg_ref[...]
    gx_sc[...] = gx.reshape(T, Bt, 4 * H)                       # stage in VMEM

    # ---- serial recurrence over T (statically unrolled; T is small) ----
    # TODO(synk): for T >= ~32 switch to lax.fori_loop(..., unroll=4..8).
    whh = whh_ref[...]                                          # f32 recurrent weight
    w2 = w2_ref[...]                                            # (1, H)
    h = jnp.zeros((Bt, H), f32)
    c = jnp.zeros((Bt, H), f32)
    for t in range(T):
        gates = gx_sc[t] + jnp.dot(h, whh, preferred_element_type=f32)  # (Bt, 4H)
        s_all = jax.nn.sigmoid(gates)            # one full-width EUP pass: i, f, o
        g = jnp.tanh(gates[:, 2 * H:3 * H])
        c = s_all[:, H:2 * H] * c + s_all[:, 0:H] * g
        h = s_all[:, 3 * H:4 * H] * jnp.tanh(c)
        # fc2 folded into the step: XLU lane reduce (idle slot), dense row store.
        logit_sc[t, :] = jnp.sum(h * w2, axis=-1)

    # ---- fc2 bias + sigmoid, batched once over the whole (T, Bt) tile ----
    o_ref[...] = jax.nn.sigmoid(logit_sc[...] + b2_ref[0, 0]).astype(o_ref.dtype)


def discriminator_lstm(x, params, *, b_tile=None, matmul_dtype=jnp.float32):
    """x: (B, T, F) batch_first.  Returns (B, T, 1) like the torch module."""
    B, T, F = x.shape
    H = params['w1'].shape[1]

    # Batch tile: multiples of 128 give lane-dense (T, b_tile) output blocks and
    # (for B >= 256) at least 2 grid tiles so v7x's two TensorCores both work.
    # Anything smaller runs as one sublane-aligned tile covering the full
    # (padded) batch, which keeps every BlockSpec equal to the full array dims.
    if b_tile is None or b_tile % 128 != 0:
        b_tile = 128 if B >= 256 else ((B + 7) // 8) * 8
    if b_tile % 128 == 0:
        Bp = ((B + b_tile - 1) // b_tile) * b_tile
    else:
        Bp = b_tile                                    # single tile
    grid = (Bp // b_tile,)

    # Time-major (T, Bp, F) presentation; pad batch with zero rows (discarded).
    xt = jnp.transpose(x.astype(jnp.float32), (1, 0, 2))
    if Bp != B:
        xt = jnp.pad(xt, ((0, 0), (0, Bp - B), (0, 0)))

    w1 = params['w1'].astype(matmul_dtype)             # hoisted matmuls may be bf16
    wih = params['wih'].astype(matmul_dtype)
    whh = params['whh'].astype(jnp.float32)            # recurrence stays f32
    w2 = params['w2'].reshape(1, H).astype(jnp.float32)

    out_tm = pl.pallas_call(
        _disc_lstm_kernel,
        out_shape=jax.ShapeDtypeStruct((T, Bp), jnp.float32),
        grid_spec=pltpu.PrefetchScalarGridSpec(
            num_scalar_prefetch=0,
            grid=grid,
            in_specs=[
                pl.BlockSpec((T, b_tile, F), lambda i: (0, i, 0)),   # x (batch tiled)
                pl.BlockSpec((F, H), lambda i: (0, 0)),              # w1
                pl.BlockSpec((1, H), lambda i: (0, 0)),              # b1
                pl.BlockSpec((H, 4 * H), lambda i: (0, 0)),          # wih
                pl.BlockSpec((H, 4 * H), lambda i: (0, 0)),          # whh
                pl.BlockSpec((1, 4 * H), lambda i: (0, 0)),          # bg
                pl.BlockSpec((1, H), lambda i: (0, 0)),              # w2 (row vector)
                pl.BlockSpec(memory_space=pltpu.MemorySpace.SMEM),   # b2 scalar
            ],
            out_specs=pl.BlockSpec((T, b_tile), lambda i: (0, i)),   # lane-dense out
            scratch_shapes=[
                pltpu.VMEM((T, b_tile, 4 * H), jnp.float32),         # gx_sc
                pltpu.VMEM((T, b_tile), jnp.float32),                # logit_sc
            ],
        ),
        compiler_params=pltpu.CompilerParams(
            dimension_semantics=("parallel",)),   # batch tiles shard across TCs (v7x)
    )(xt, w1, params['b1'].astype(jnp.float32), wih, whh,
      params['bg'].astype(jnp.float32), w2, params['b2'].astype(jnp.float32))

    # (T, Bp) -> (B, T, 1)
    return jnp.transpose(out_tm[:, :B])[..., None]


def _reference(x, p):
    """Pure-JAX reference of the same forward (for a correctness check)."""
    H = p['w1'].shape[1]
    B, T, _ = x.shape
    z1 = jnp.einsum('btf,fh->bth', x, p['w1']) + p['b1']
    z1 = jnp.where(z1 > 0, z1, 0.1 * z1)
    h = jnp.zeros((B, H), jnp.float32)
    c = jnp.zeros((B, H), jnp.float32)
    outs = []
    for t in range(T):
        gates = z1[:, t, :] @ p['wih'] + h @ p['whh'] + p['bg']
        i = jax.nn.sigmoid(gates[:, :H])
        f = jax.nn.sigmoid(gates[:, H:2 * H])
        g = jnp.tanh(gates[:, 2 * H:3 * H])
        o = jax.nn.sigmoid(gates[:, 3 * H:])
        c = f * c + i * g
        h = o * jnp.tanh(c)
        outs.append(jax.nn.sigmoid(h @ p['w2'] + p['b2']))
    return jnp.stack(outs, axis=1)


def init_params(key, feat, hidden):
    ks = jax.random.split(key, 7)
    s = 0.1
    return {
        'w1':  s * jax.random.normal(ks[0], (feat, hidden), jnp.float32),
        'b1':  s * jax.random.normal(ks[1], (1, hidden), jnp.float32),
        'wih': s * jax.random.normal(ks[2], (hidden, 4 * hidden), jnp.float32),
        'whh': s * jax.random.normal(ks[3], (hidden, 4 * hidden), jnp.float32),
        'bg':  s * jax.random.normal(ks[4], (1, 4 * hidden), jnp.float32),
        'w2':  s * jax.random.normal(ks[5], (hidden, 1), jnp.float32),
        'b2':  s * jax.random.normal(ks[6], (1, 1), jnp.float32),
    }


if __name__ == "__main__":
    # Module config: data_shape = (seq_len, n_features) = (8, 16); internal_dim = 32.
    T, F, H = 8, 16, 32
    key = jax.random.PRNGKey(0)
    kx1, kx2, kp = jax.random.split(key, 3)
    params = init_params(kp, F, H)

    # Small batch (module demo size): single padded, sublane-aligned tile.
    x = jax.random.normal(kx1, (2, T, F), jnp.float32)
    out = jax.block_until_ready(discriminator_lstm(x, params))
    ref = _reference(x, params)
    assert out.shape == (2, T, 1)
    assert jnp.allclose(out, ref, rtol=1e-5, atol=1e-5), "f32 mismatch (B=2)"

    # Multi-tile path: two lane-dense 128-row tiles on the parallel batch grid.
    xb = jax.random.normal(kx2, (256, T, F), jnp.float32)
    outb = jax.block_until_ready(discriminator_lstm(xb, params))
    refb = _reference(xb, params)
    assert outb.shape == (256, T, 1)
    assert jnp.allclose(outb, refb, rtol=1e-5, atol=1e-5), "f32 mismatch (B=256)"

    # bf16 hoisted matmuls (recurrence stays f32): looser tolerance.
    outbf = jax.block_until_ready(
        discriminator_lstm(x, params, matmul_dtype=jnp.bfloat16))
    assert jnp.allclose(outbf, ref, rtol=0, atol=5e-2), "bf16 variant mismatch"

    print("KERNEL_OK")
</pallas_src>

<mosaic_0001>
module attributes {stable_mosaic.version = 11 : i64} {
  func.func @_disc_lstm_kernel(%arg0: i32, %arg1: memref<8x8x16xf32, #tpu.memory_space<vmem>>, %arg2: memref<16x32xf32, #tpu.memory_space<vmem>>, %arg3: memref<1x32xf32, #tpu.memory_space<vmem>>, %arg4: memref<32x128xf32, #tpu.memory_space<vmem>>, %arg5: memref<32x128xf32, #tpu.memory_space<vmem>>, %arg6: memref<1x128xf32, #tpu.memory_space<vmem>>, %arg7: memref<1x32xf32, #tpu.memory_space<vmem>>, %arg8: memref<1x1xf32, #tpu.memory_space<smem>>, %arg9: memref<8x8xf32, #tpu.memory_space<vmem>>, %arg10: memref<8x8x128xf32, #tpu.memory_space<vmem>>, %arg11: memref<8x8xf32, #tpu.memory_space<vmem>>) attributes {dimension_semantics = [#tpu.dimension_semantics<parallel>], iteration_bounds = array<i64: 1>, scalar_prefetch = 0 : i64, scratch_operands = 2 : i64, tpu.core_type = #tpu.core_type<tc>, window_params = [{transform_indices = @transform_0, window_bounds = array<i64: 8, 8, 16>}, {pipeline_mode = #tpu.pipeline_mode<synchronous>, transform_indices = @transform_1, window_bounds = array<i64: 16, 32>}, {pipeline_mode = #tpu.pipeline_mode<synchronous>, transform_indices = @transform_2, window_bounds = array<i64: 1, 32>}, {pipeline_mode = #tpu.pipeline_mode<synchronous>, transform_indices = @transform_3, window_bounds = array<i64: 32, 128>}, {pipeline_mode = #tpu.pipeline_mode<synchronous>, transform_indices = @transform_4, window_bounds = array<i64: 32, 128>}, {pipeline_mode = #tpu.pipeline_mode<synchronous>, transform_indices = @transform_5, window_bounds = array<i64: 1, 128>}, {pipeline_mode = #tpu.pipeline_mode<synchronous>, transform_indices = @transform_6, window_bounds = array<i64: 1, 32>}, {transform_indices = @transform_7, window_bounds = array<i64: 1, 1>}, {transform_indices = @transform_8, window_bounds = array<i64: 8, 8>}]} {
    %c0 = arith.constant 0 : index
    %c0_0 = arith.constant 0 : index
    %c0_1 = arith.constant 0 : index
    %0 = vector.load %arg1[%c0, %c0_0, %c0_1] : memref<8x8x16xf32, #tpu.memory_space<vmem>>, vector<8x8x16xf32>
    %1 = vector.shape_cast %0 : vector<8x8x16xf32> to vector<64x16xf32>
    %c0_2 = arith.constant 0 : index
    %c0_3 = arith.constant 0 : index
    %2 = vector.load %arg2[%c0_2, %c0_3] : memref<16x32xf32, #tpu.memory_space<vmem>>, vector<16x32xf32>
    %cst = arith.constant dense<0.000000e+00> : vector<64x32xf32>
    %3 = tpu.matmul %1, %2, %cst {dimension_numbers = #tpu.dot_dimension_numbers<[1], [0], [0], [1], [0, 0, 1, 1], [], []>} : vector<64x16xf32>, vector<16x32xf32>, vector<64x32xf32> -> vector<64x32xf32>
    %c0_4 = arith.constant 0 : index
    %c0_5 = arith.constant 0 : index
    %4 = vector.load %arg3[%c0_4, %c0_5] : memref<1x32xf32, #tpu.memory_space<vmem>>, vector<1x32xf32>
    %5 = vector.broadcast %4 : vector<1x32xf32> to vector<64x32xf32>
    %6 = arith.addf %3, %5 : vector<64x32xf32>
    %cst_6 = arith.constant 0.000000e+00 : f32
    %7 = vector.broadcast %cst_6 : f32 to vector<64x32xf32>
    %8 = arith.cmpf ogt, %6, %7 : vector<64x32xf32>
    %cst_7 = arith.constant 1.000000e-01 : f32
    %9 = vector.broadcast %cst_7 : f32 to vector<64x32xf32>
    %10 = arith.mulf %9, %6 : vector<64x32xf32>
    %11 = arith.select %8, %6, %10 : vector<64x32xi1>, vector<64x32xf32>
    %c0_8 = arith.constant 0 : index
    %c0_9 = arith.constant 0 : index
    %12 = vector.load %arg4[%c0_8, %c0_9] : memref<32x128xf32, #tpu.memory_space<vmem>>, vector<32x128xf32>
    %cst_10 = arith.constant dense<0.000000e+00> : vector<64x128xf32>
    %13 = tpu.matmul %11, %12, %cst_10 {dimension_numbers = #tpu.dot_dimension_numbers<[1], [0], [0], [1], [0, 0, 1, 1], [], []>} : vector<64x32xf32>, vector<32x128xf32>, vector<64x128xf32> -> vector<64x128xf32>
    %c0_11 = arith.constant 0 : index
    %c0_12 = arith.constant 0 : index
    %14 = vector.load %arg6[%c0_11, %c0_12] : memref<1x128xf32, #tpu.memory_space<vmem>>, vector<1x128xf32>
    %15 = vector.broadcast %14 : vector<1x128xf32> to vector<64x128xf32>
    %16 = arith.addf %13, %15 : vector<64x128xf32>
    %17 = vector.shape_cast %16 : vector<64x128xf32> to vector<8x8x128xf32>
    %c0_13 = arith.constant 0 : index
    %c0_14 = arith.constant 0 : index
    %c0_15 = arith.constant 0 : index
    %18 = vector.load %arg10[%c0_13, %c0_14, %c0_15] : memref<8x8x128xf32, #tpu.memory_space<vmem>>, vector<8x8x128xf32>
    tpu.vector_store %arg10[%c0_13, %c0_14, %c0_15], %17 {strides = array<i32>} : memref<8x8x128xf32, #tpu.memory_space<vmem>>, vector<8x8x128xf32>,
    %c0_16 = arith.constant 0 : index
    %c0_17 = arith.constant 0 : index
    %19 = vector.load %arg5[%c0_16, %c0_17] : memref<32x128xf32, #tpu.memory_space<vmem>>, vector<32x128xf32>
    %c0_18 = arith.constant 0 : index
    %c0_19 = arith.constant 0 : index
    %20 = vector.load %arg7[%c0_18, %c0_19] : memref<1x32xf32, #tpu.memory_space<vmem>>, vector<1x32xf32>
    %cst_20 = arith.constant 0.000000e+00 : f32
    %21 = vector.broadcast %cst_20 : f32 to vector<8x32xf32>
    %cst_21 = arith.constant 0.000000e+00 : f32
    %22 = vector.broadcast %cst_21 : f32 to vector<8x32xf32>
    %c0_22 = arith.constant 0 : index
    %c0_23 = arith.constant 0 : index
    %c0_24 = arith.constant 0 : index
    %23 = vector.load %arg10[%c0_22, %c0_23, %c0_24] : memref<8x8x128xf32, #tpu.memory_space<vmem>>, vector<1x8x128xf32>
    %24 = vector.shape_cast %23 : vector<1x8x128xf32> to vector<8x128xf32>
    %cst_25 = arith.constant dense<0.000000e+00> : vector<8x128xf32>
    %25 = tpu.matmul %21, %19, %cst_25 {dimension_numbers = #tpu.dot_dimension_numbers<[1], [0], [0], [1], [0, 0, 1, 1], [], []>} : vector<8x32xf32>, vector<32x128xf32>, vector<8x128xf32> -> vector<8x128xf32>
    %26 = arith.addf %24, %25 : vector<8x128xf32>
    %27 = arith.negf %26 : vector<8x128xf32>
    %28 = math.exp %27 : vector<8x128xf32>
    %cst_26 = arith.constant 1.000000e+00 : f32
    %29 = vector.broadcast %cst_26 : f32 to vector<8x128xf32>
    %30 = arith.addf %29, %28 : vector<8x128xf32>
    %31 = arith.divf %29, %30 : vector<8x128xf32>
    %32 = vector.extract_strided_slice %26 {offsets = [0, 64], sizes = [8, 32], strides = [1, 1]} : vector<8x128xf32> to vector<8x32xf32>
    %33 = math.tanh %32 : vector<8x32xf32>
    %34 = vector.extract_strided_slice %31 {offsets = [0, 32], sizes = [8, 32], strides = [1, 1]} : vector<8x128xf32> to vector<8x32xf32>
    %35 = arith.mulf %34, %22 : vector<8x32xf32>
    %36 = vector.extract_strided_slice %31 {offsets = [0, 0], sizes = [8, 32], strides = [1, 1]} : vector<8x128xf32> to vector<8x32xf32>
    %37 = arith.mulf %36, %33 : vector<8x32xf32>
    %38 = arith.addf %35, %37 : vector<8x32xf32>
    %39 = vector.extract_strided_slice %31 {offsets = [0, 96], sizes = [8, 32], strides = [1, 1]} : vector<8x128xf32> to vector<8x32xf32>
    %40 = math.tanh %38 : vector<8x32xf32>
    %41 = arith.mulf %39, %40 : vector<8x32xf32>
    %42 = vector.broadcast %20 : vector<1x32xf32> to vector<8x32xf32>
    %43 = arith.mulf %41, %42 : vector<8x32xf32>
    %cst_27 = arith.constant dense<0.000000e+00> : vector<8xf32>
    %44 = vector.multi_reduction <add>, %43, %cst_27 [1] : vector<8x32xf32> to vector<8xf32>
    %c0_28 = arith.constant 0 : index
    %c0_29 = arith.constant 0 : index
    %45 = vector.load %arg11[%c0_28, %c0_29] : memref<8x8xf32, #tpu.memory_space<vmem>>, vector<1x8xf32>
    %46 = vector.shape_cast %45 : vector<1x8xf32> to vector<8xf32>
    %47 = vector.shape_cast %44 : vector<8xf32> to vector<1x8xf32>
    tpu.vector_store %arg11[%c0_28, %c0_29], %47 {strides = array<i32>} : memref<8x8xf32, #tpu.memory_space<vmem>>, vector<1x8xf32>,
    %c1 = arith.constant 1 : index
    %c0_30 = arith.constant 0 : index
    %c0_31 = arith.constant 0 : index
    %48 = vector.load %arg10[%c1, %c0_30, %c0_31] : memref<8x8x128xf32, #tpu.memory_space<vmem>>, vector<1x8x128xf32>
    %49 = vector.shape_cast %48 : vector<1x8x128xf32> to vector<8x128xf32>
    %cst_32 = arith.constant dense<0.000000e+00> : vector<8x128xf32>
    %50 = tpu.matmul %41, %19, %cst_32 {dimension_numbers = #tpu.dot_dimension_numbers<[1], [0], [0], [1], [0, 0, 1, 1], [], []>} : vector<8x32xf32>, vector<32x128xf32>, vector<8x128xf32> -> vector<8x128xf32>
    %51 = arith.addf %49, %50 : vector<8x128xf32>
    %52 = arith.negf %51 : vector<8x128xf32>
    %53 = math.exp %52 : vector<8x128xf32>
    %cst_33 = arith.constant 1.000000e+00 : f32
    %54 = vector.broadcast %cst_33 : f32 to vector<8x128xf32>
    %55 = arith.addf %54, %53 : vector<8x128xf32>
    %56 = arith.divf %54, %55 : vector<8x128xf32>
    %57 = vector.extract_strided_slice %51 {offsets = [0, 64], sizes = [8, 32], strides = [1, 1]} : vector<8x128xf32> to vector<8x32xf32>
    %58 = math.tanh %57 : vector<8x32xf32>
    %59 = vector.extract_strided_slice %56 {offsets = [0, 32], sizes = [8, 32], strides = [1, 1]} : vector<8x128xf32> to vector<8x32xf32>
    %60 = arith.mulf %59, %38 : vector<8x32xf32>
    %61 = vector.extract_strided_slice %56 {offsets = [0, 0], sizes = [8, 32], strides = [1, 1]} : vector<8x128xf32> to vector<8x32xf32>
    %62 = arith.mulf %61, %58 : vector<8x32xf32>
    %63 = arith.addf %60, %62 : vector<8x32xf32>
    %64 = vector.extract_strided_slice %56 {offsets = [0, 96], sizes = [8, 32], strides = [1, 1]} : vector<8x128xf32> to vector<8x32xf32>
    %65 = math.tanh %63 : vector<8x32xf32>
    %66 = arith.mulf %64, %65 : vector<8x32xf32>
    %67 = vector.broadcast %20 : vector<1x32xf32> to vector<8x32xf32>
    %68 = arith.mulf %66, %67 : vector<8x32xf32>
    %cst_34 = arith.constant dense<0.000000e+00> : vector<8xf32>
    %69 = vector.multi_reduction <add>, %68, %cst_34 [1] : vector<8x32xf32> to vector<8xf32>
    %c1_35 = arith.constant 1 : index
    %c0_36 = arith.constant 0 : index
    %70 = vector.load %arg11[%c1_35, %c0_36] : memref<8x8xf32, #tpu.memory_space<vmem>>, vector<1x8xf32>
    %71 = vector.shape_cast %70 : vector<1x8xf32> to vector<8xf32>
    %72 = vector.shape_cast %69 : vector<8xf32> to vector<1x8xf32>
    tpu.vector_store %arg11[%c1_35, %c0_36], %72 {strides = array<i32>} : memref<8x8xf32, #tpu.memory_space<vmem>>, vector<1x8xf32>,
    %c2 = arith.constant 2 : index
    %c0_37 = arith.constant 0 : index
    %c0_38 = arith.constant 0 : index
    %73 = vector.load %arg10[%c2, %c0_37, %c0_38] : memref<8x8x128xf32, #tpu.memory_space<vmem>>, vector<1x8x128xf32>
    %74 = vector.shape_cast %73 : vector<1x8x128xf32> to vector<8x128xf32>
    %cst_39 = arith.constant dense<0.000000e+00> : vector<8x128xf32>
    %75 = tpu.matmul %66, %19, %cst_39 {dimension_numbers = #tpu.dot_dimension_numbers<[1], [0], [0], [1], [0, 0, 1, 1], [], []>} : vector<8x32xf32>, vector<32x128xf32>, vector<8x128xf32> -> vector<8x128xf32>
    %76 = arith.addf %74, %75 : vector<8x128xf32>
    %77 = arith.negf %76 : vector<8x128xf32>
    %78 = math.exp %77 : vector<8x128xf32>
    %cst_40 = arith.constant 1.000000e+00 : f32
    %79 = vector.broadcast %cst_40 : f32 to vector<8x128xf32>
    %80 = arith.addf %79, %78 : vector<8x128xf32>
    %81 = arith.divf %79, %80 : vector<8x128xf32>
    %82 = vector.extract_strided_slice %76 {offsets = [0, 64], sizes = [8, 32], strides = [1, 1]} : vector<8x128xf32> to vector<8x32xf32>
    %83 = math.tanh %82 : vector<8x32xf32>
    %84 = vector.extract_strided_slice %81 {offsets = [0, 32], sizes = [8, 32], strides = [1, 1]} : vector<8x128xf32> to vector<8x32xf32>
    %85 = arith.mulf %84, %63 : vector<8x32xf32>
    %86 = vector.extract_strided_slice %81 {offsets = [0, 0], sizes = [8, 32], strides = [1, 1]} : vector<8x128xf32> to vector<8x32xf32>
    %87 = arith.mulf %86, %83 : vector<8x32xf32>
    %88 = arith.addf %85, %87 : vector<8x32xf32>
    %89 = vector.extract_strided_slice %81 {offsets = [0, 96], sizes = [8, 32], strides = [1, 1]} : vector<8x128xf32> to vector<8x32xf32>
    %90 = math.tanh %88 : vector<8x32xf32>
    %91 = arith.mulf %89, %90 : vector<8x32xf32>
    %92 = vector.broadcast %20 : vector<1x32xf32> to vector<8x32xf32>
    %93 = arith.mulf %91, %92 : vector<8x32xf32>
    %cst_41 = arith.constant dense<0.000000e+00> : vector<8xf32>
    %94 = vector.multi_reduction <add>, %93, %cst_41 [1] : vector<8x32xf32> to vector<8xf32>
    %c2_42 = arith.constant 2 : index
    %c0_43 = arith.constant 0 : index
    %95 = vector.load %arg11[%c2_42, %c0_43] : memref<8x8xf32, #tpu.memory_space<vmem>>, vector<1x8xf32>
    %96 = vector.shape_cast %95 : vector<1x8xf32> to vector<8xf32>
    %97 = vector.shape_cast %94 : vector<8xf32> to vector<1x8xf32>
    tpu.vector_store %arg11[%c2_42, %c0_43], %97 {strides = array<i32>} : memref<8x8xf32, #tpu.memory_space<vmem>>, vector<1x8xf32>,
    %c3 = arith.constant 3 : index
    %c0_44 = arith.constant 0 : index
    %c0_45 = arith.constant 0 : index
    %98 = vector.load %arg10[%c3, %c0_44, %c0_45] : memref<8x8x128xf32, #tpu.memory_space<vmem>>, vector<1x8x128xf32>
    %99 = vector.shape_cast %98 : vector<1x8x128xf32> to vector<8x128xf32>
    %cst_46 = arith.constant dense<0.000000e+00> : vector<8x128xf32>
    %100 = tpu.matmul %91, %19, %cst_46 {dimension_numbers = #tpu.dot_dimension_numbers<[1], [0], [0], [1], [0, 0, 1, 1], [], []>} : vector<8x32xf32>, vector<32x128xf32>, vector<8x128xf32> -> vector<8x128xf32>
    %101 = arith.addf %99, %100 : vector<8x128xf32>
    %102 = arith.negf %101 : vector<8x128xf32>
    %103 = math.exp %102 : vector<8x128xf32>
    %cst_47 = arith.constant 1.000000e+00 : f32
    %104 = vector.broadcast %cst_47 : f32 to vector<8x128xf32>
    %105 = arith.addf %104, %103 : vector<8x128xf32>
    %106 = arith.divf %104, %105 : vector<8x128xf32>
    %107 = vector.extract_strided_slice %101 {offsets = [0, 64], sizes = [8, 32], strides = [1, 1]} : vector<8x128xf32> to vector<8x32xf32>
    %108 = math.tanh %107 : vector<8x32xf32>
    %109 = vector.extract_strided_slice %106 {offsets = [0, 32], sizes = [8, 32], strides = [1, 1]} : vector<8x128xf32> to vector<8x32xf32>
    %110 = arith.mulf %109, %88 : vector<8x32xf32>
    %111 = vector.extract_strided_slice %106 {offsets = [0, 0], sizes = [8, 32], strides = [1, 1]} : vector<8x128xf32> to vector<8x32xf32>
    %112 = arith.mulf %111, %108 : vector<8x32xf32>
    %113 = arith.addf %110, %112 : vector<8x32xf32>
    %114 = vector.extract_strided_slice %106 {offsets = [0, 96], sizes = [8, 32], strides = [1, 1]} : vector<8x128xf32> to vector<8x32xf32>
    %115 = math.tanh %113 : vector<8x32xf32>
    %116 = arith.mulf %114, %115 : vector<8x32xf32>
    %117 = vector.broadcast %20 : vector<1x32xf32> to vector<8x32xf32>
    %118 = arith.mulf %116, %117 : vector<8x32xf32>
    %cst_48 = arith.constant dense<0.000000e+00> : vector<8xf32>
    %119 = vector.multi_reduction <add>, %118, %cst_48 [1] : vector<8x32xf32> to vector<8xf32>
    %c3_49 = arith.constant 3 : index
    %c0_50 = arith.constant 0 : index
    %120 = vector.load %arg11[%c3_49, %c0_50] : memref<8x8xf32, #tpu.memory_space<vmem>>, vector<1x8xf32>
    %121 = vector.shape_cast %120 : vector<1x8xf32> to vector<8xf32>
    %122 = vector.shape_cast %119 : vector<8xf32> to vector<1x8xf32>
    tpu.vector_store %arg11[%c3_49, %c0_50], %122 {strides = array<i32>} : memref<8x8xf32, #tpu.memory_space<vmem>>, vector<1x8xf32>,
    %c4 = arith.constant 4 : index
    %c0_51 = arith.constant 0 : index
    %c0_52 = arith.constant 0 : index
    %123 = vector.load %arg10[%c4, %c0_51, %c0_52] : memref<8x8x128xf32, #tpu.memory_space<vmem>>, vector<1x8x128xf32>
    %124 = vector.shape_cast %123 : vector<1x8x128xf32> to vector<8x128xf32>
    %cst_53 = arith.constant dense<0.000000e+00> : vector<8x128xf32>
    %125 = tpu.matmul %116, %19, %cst_53 {dimension_numbers = #tpu.dot_dimension_numbers<[1], [0], [0], [1], [0, 0, 1, 1], [], []>} : vector<8x32xf32>, vector<32x128xf32>, vector<8x128xf32> -> vector<8x128xf32>
    %126 = arith.addf %124, %125 : vector<8x128xf32>
    %127 = arith.negf %126 : vector<8x128xf32>
    %128 = math.exp %127 : vector<8x128xf32>
    %cst_54 = arith.constant 1.000000e+00 : f32
    %129 = vector.broadcast %cst_54 : f32 to vector<8x128xf32>
    %130 = arith.addf %129, %128 : vector<8x128xf32>
    %131 = arith.divf %129, %130 : vector<8x128xf32>
    %132 = vector.extract_strided_slice %126 {offsets = [0, 64], sizes = [8, 32], strides = [1, 1]} : vector<8x128xf32> to vector<8x32xf32>
    %133 = math.tanh %132 : vector<8x32xf32>
    %134 = vector.extract_strided_slice %131 {offsets = [0, 32], sizes = [8, 32], strides = [1, 1]} : vector<8x128xf32> to vector<8x32xf32>
    %135 = arith.mulf %134, %113 : vector<8x32xf32>
    %136 = vector.extract_strided_slice %131 {offsets = [0, 0], sizes = [8, 32], strides = [1, 1]} : vector<8x128xf32> to vector<8x32xf32>
    %137 = arith.mulf %136, %133 : vector<8x32xf32>
    %138 = arith.addf %135, %137 : vector<8x32xf32>
    %139 = vector.extract_strided_slice %131 {offsets = [0, 96], sizes = [8, 32], strides = [1, 1]} : vector<8x128xf32> to vector<8x32xf32>
    %140 = math.tanh %138 : vector<8x32xf32>
    %141 = arith.mulf %139, %140 : vector<8x32xf32>
    %142 = vector.broadcast %20 : vector<1x32xf32> to vector<8x32xf32>
    %143 = arith.mulf %141, %142 : vector<8x32xf32>
    %cst_55 = arith.constant dense<0.000000e+00> : vector<8xf32>
    %144 = vector.multi_reduction <add>, %143, %cst_55 [1] : vector<8x32xf32> to vector<8xf32>
    %c4_56 = arith.constant 4 : index
    %c0_57 = arith.constant 0 : index
    %145 = vector.load %arg11[%c4_56, %c0_57] : memref<8x8xf32, #tpu.memory_space<vmem>>, vector<1x8xf32>
    %146 = vector.shape_cast %145 : vector<1x8xf32> to vector<8xf32>
    %147 = vector.shape_cast %144 : vector<8xf32> to vector<1x8xf32>
    tpu.vector_store %arg11[%c4_56, %c0_57], %147 {strides = array<i32>} : memref<8x8xf32, #tpu.memory_space<vmem>>, vector<1x8xf32>,
    %c5 = arith.constant 5 : index
    %c0_58 = arith.constant 0 : index
    %c0_59 = arith.constant 0 : index
    %148 = vector.load %arg10[%c5, %c0_58, %c0_59] : memref<8x8x128xf32, #tpu.memory_space<vmem>>, vector<1x8x128xf32>
    %149 = vector.shape_cast %148 : vector<1x8x128xf32> to vector<8x128xf32>
    %cst_60 = arith.constant dense<0.000000e+00> : vector<8x128xf32>
    %150 = tpu.matmul %141, %19, %cst_60 {dimension_numbers = #tpu.dot_dimension_numbers<[1], [0], [0], [1], [0, 0, 1, 1], [], []>} : vector<8x32xf32>, vector<32x128xf32>, vector<8x128xf32> -> vector<8x128xf32>
    %151 = arith.addf %149, %150 : vector<8x128xf32>
    %152 = arith.negf %151 : vector<8x128xf32>
    %153 = math.exp %152 : vector<8x128xf32>
    %cst_61 = arith.constant 1.000000e+00 : f32
    %154 = vector.broadcast %cst_61 : f32 to vector<8x128xf32>
    %155 = arith.addf %154, %153 : vector<8x128xf32>
    %156 = arith.divf %154, %155 : vector<8x128xf32>
    %157 = vector.extract_strided_slice %151 {offsets = [0, 64], sizes = [8, 32], strides = [1, 1]} : vector<8x128xf32> to vector<8x32xf32>
    %158 = math.tanh %157 : vector<8x32xf32>
    %159 = vector.extract_strided_slice %156 {offsets = [0, 32], sizes = [8, 32], strides = [1, 1]} : vector<8x128xf32> to vector<8x32xf32>
    %160 = arith.mulf %159, %138 : vector<8x32xf32>
    %161 = vector.extract_strided_slice %156 {offsets = [0, 0], sizes = [8, 32], strides = [1, 1]} : vector<8x128xf32> to vector<8x32xf32>
    %162 = arith.mulf %161, %158 : vector<8x32xf32>
    %163 = arith.addf %160, %162 : vector<8x32xf32>
    %164 = vector.extract_strided_slice %156 {offsets = [0, 96], sizes = [8, 32], strides = [1, 1]} : vector<8x128xf32> to vector<8x32xf32>
    %165 = math.tanh %163 : vector<8x32xf32>
    %166 = arith.mulf %164, %165 : vector<8x32xf32>
    %167 = vector.broadcast %20 : vector<1x32xf32> to vector<8x32xf32>
    %168 = arith.mulf %166, %167 : vector<8x32xf32>
    %cst_62 = arith.constant dense<0.000000e+00> : vector<8xf32>
    %169 = vector.multi_reduction <add>, %168, %cst_62 [1] : vector<8x32xf32> to vector<8xf32>
    %c5_63 = arith.constant 5 : index
    %c0_64 = arith.constant 0 : index
    %170 = vector.load %arg11[%c5_63, %c0_64] : memref<8x8xf32, #tpu.memory_space<vmem>>, vector<1x8xf32>
    %171 = vector.shape_cast %170 : vector<1x8xf32> to vector<8xf32>
    %172 = vector.shape_cast %169 : vector<8xf32> to vector<1x8xf32>
    tpu.vector_store %arg11[%c5_63, %c0_64], %172 {strides = array<i32>} : memref<8x8xf32, #tpu.memory_space<vmem>>, vector<1x8xf32>,
    %c6 = arith.constant 6 : index
    %c0_65 = arith.constant 0 : index
    %c0_66 = arith.constant 0 : index
    %173 = vector.load %arg10[%c6, %c0_65, %c0_66] : memref<8x8x128xf32, #tpu.memory_space<vmem>>, vector<1x8x128xf32>
    %174 = vector.shape_cast %173 : vector<1x8x128xf32> to vector<8x128xf32>
    %cst_67 = arith.constant dense<0.000000e+00> : vector<8x128xf32>
    %175 = tpu.matmul %166, %19, %cst_67 {dimension_numbers = #tpu.dot_dimension_numbers<[1], [0], [0], [1], [0, 0, 1, 1], [], []>} : vector<8x32xf32>, vector<32x128xf32>, vector<8x128xf32> -> vector<8x128xf32>
    %176 = arith.addf %174, %175 : vector<8x128xf32>
    %177 = arith.negf %176 : vector<8x128xf32>
    %178 = math.exp %177 : vector<8x128xf32>
    %cst_68 = arith.constant 1.000000e+00 : f32
    %179 = vector.broadcast %cst_68 : f32 to vector<8x128xf32>
    %180 = arith.addf %179, %178 : vector<8x128xf32>
    %181 = arith.divf %179, %180 : vector<8x128xf32>
    %182 = vector.extract_strided_slice %176 {offsets = [0, 64], sizes = [8, 32], strides = [1, 1]} : vector<8x128xf32> to vector<8x32xf32>
    %183 = math.tanh %182 : vector<8x32xf32>
    %184 = vector.extract_strided_slice %181 {offsets = [0, 32], sizes = [8, 32], strides = [1, 1]} : vector<8x128xf32> to vector<8x32xf32>
    %185 = arith.mulf %184, %163 : vector<8x32xf32>
    %186 = vector.extract_strided_slice %181 {offsets = [0, 0], sizes = [8, 32], strides = [1, 1]} : vector<8x128xf32> to vector<8x32xf32>
    %187 = arith.mulf %186, %183 : vector<8x32xf32>
    %188 = arith.addf %185, %187 : vector<8x32xf32>
    %189 = vector.extract_strided_slice %181 {offsets = [0, 96], sizes = [8, 32], strides = [1, 1]} : vector<8x128xf32> to vector<8x32xf32>
    %190 = math.tanh %188 : vector<8x32xf32>
    %191 = arith.mulf %189, %190 : vector<8x32xf32>
    %192 = vector.broadcast %20 : vector<1x32xf32> to vector<8x32xf32>
    %193 = arith.mulf %191, %192 : vector<8x32xf32>
    %cst_69 = arith.constant dense<0.000000e+00> : vector<8xf32>
    %194 = vector.multi_reduction <add>, %193, %cst_69 [1] : vector<8x32xf32> to vector<8xf32>
    %c6_70 = arith.constant 6 : index
    %c0_71 = arith.constant 0 : index
    %195 = vector.load %arg11[%c6_70, %c0_71] : memref<8x8xf32, #tpu.memory_space<vmem>>, vector<1x8xf32>
    %196 = vector.shape_cast %195 : vector<1x8xf32> to vector<8xf32>
    %197 = vector.shape_cast %194 : vector<8xf32> to vector<1x8xf32>
    tpu.vector_store %arg11[%c6_70, %c0_71], %197 {strides = array<i32>} : memref<8x8xf32, #tpu.memory_space<vmem>>, vector<1x8xf32>,
    %c7 = arith.constant 7 : index
    %c0_72 = arith.constant 0 : index
    %c0_73 = arith.constant 0 : index
    %198 = vector.load %arg10[%c7, %c0_72, %c0_73] : memref<8x8x128xf32, #tpu.memory_space<vmem>>, vector<1x8x128xf32>
    %199 = vector.shape_cast %198 : vector<1x8x128xf32> to vector<8x128xf32>
    %cst_74 = arith.constant dense<0.000000e+00> : vector<8x128xf32>
    %200 = tpu.matmul %191, %19, %cst_74 {dimension_numbers = #tpu.dot_dimension_numbers<[1], [0], [0], [1], [0, 0, 1, 1], [], []>} : vector<8x32xf32>, vector<32x128xf32>, vector<8x128xf32> -> vector<8x128xf32>
    %201 = arith.addf %199, %200 : vector<8x128xf32>
    %202 = arith.negf %201 : vector<8x128xf32>
    %203 = math.exp %202 : vector<8x128xf32>
    %cst_75 = arith.constant 1.000000e+00 : f32
    %204 = vector.broadcast %cst_75 : f32 to vector<8x128xf32>
    %205 = arith.addf %204, %203 : vector<8x128xf32>
    %206 = arith.divf %204, %205 : vector<8x128xf32>
    %207 = vector.extract_strided_slice %201 {offsets = [0, 64], sizes = [8, 32], strides = [1, 1]} : vector<8x128xf32> to vector<8x32xf32>
    %208 = math.tanh %207 : vector<8x32xf32>
    %209 = vector.extract_strided_slice %206 {offsets = [0, 32], sizes = [8, 32], strides = [1, 1]} : vector<8x128xf32> to vector<8x32xf32>
    %210 = arith.mulf %209, %188 : vector<8x32xf32>
    %211 = vector.extract_strided_slice %206 {offsets = [0, 0], sizes = [8, 32], strides = [1, 1]} : vector<8x128xf32> to vector<8x32xf32>
    %212 = arith.mulf %211, %208 : vector<8x32xf32>
    %213 = arith.addf %210, %212 : vector<8x32xf32>
    %214 = vector.extract_strided_slice %206 {offsets = [0, 96], sizes = [8, 32], strides = [1, 1]} : vector<8x128xf32> to vector<8x32xf32>
    %215 = math.tanh %213 : vector<8x32xf32>
    %216 = arith.mulf %214, %215 : vector<8x32xf32>
    %217 = vector.broadcast %20 : vector<1x32xf32> to vector<8x32xf32>
    %218 = arith.mulf %216, %217 : vector<8x32xf32>
    %cst_76 = arith.constant dense<0.000000e+00> : vector<8xf32>
    %219 = vector.multi_reduction <add>, %218, %cst_76 [1] : vector<8x32xf32> to vector<8xf32>
    %c7_77 = arith.constant 7 : index
    %c0_78 = arith.constant 0 : index
    %220 = vector.load %arg11[%c7_77, %c0_78] : memref<8x8xf32, #tpu.memory_space<vmem>>, vector<1x8xf32>
    %221 = vector.shape_cast %220 : vector<1x8xf32> to vector<8xf32>
    %222 = vector.shape_cast %219 : vector<8xf32> to vector<1x8xf32>
    tpu.vector_store %arg11[%c7_77, %c0_78], %222 {strides = array<i32>} : memref<8x8xf32, #tpu.memory_space<vmem>>, vector<1x8xf32>,
    %c0_79 = arith.constant 0 : index
    %c0_80 = arith.constant 0 : index
    %223 = vector.load %arg11[%c0_79, %c0_80] : memref<8x8xf32, #tpu.memory_space<vmem>>, vector<8x8xf32>
    %c0_81 = arith.constant 0 : index
    %c0_82 = arith.constant 0 : index
    %224 = memref.load %arg8[%c0_81, %c0_82] : memref<1x1xf32, #tpu.memory_space<smem>>
    %225 = vector.broadcast %224 : f32 to vector<8x8xf32>
    %226 = arith.addf %223, %225 : vector<8x8xf32>
    %227 = arith.negf %226 : vector<8x8xf32>
    %228 = math.exp %227 : vector<8x8xf32>
    %cst_83 = arith.constant 1.000000e+00 : f32
    %229 = vector.broadcast %cst_83 : f32 to vector<8x8xf32>
    %230 = arith.addf %229, %228 : vector<8x8xf32>
    %231 = arith.divf %229, %230 : vector<8x8xf32>
    %c0_84 = arith.constant 0 : index
    %c0_85 = arith.constant 0 : index
    %232 = vector.load %arg9[%c0_84, %c0_85] : memref<8x8xf32, #tpu.memory_space<vmem>>, vector<8x8xf32>
    tpu.vector_store %arg9[%c0_84, %c0_85], %231 {strides = array<i32>} : memref<8x8xf32, #tpu.memory_space<vmem>>, vector<8x8xf32>,
    return
  }
  func.func @transform_0(%arg0: i32) -> (i32, i32, i32) {
    %c0_i32 = arith.constant 0 : i32
    %c0_i32_0 = arith.constant 0 : i32
    %c0_i32_1 = arith.constant 0 : i32
    return %c0_i32, %arg0, %c0_i32_0 : i32, i32, i32
  }
  func.func @transform_1(%arg0: i32) -> (i32, i32) {
    %c0_i32 = arith.constant 0 : i32
    %c0_i32_0 = arith.constant 0 : i32
    %c0_i32_1 = arith.constant 0 : i32
    return %c0_i32, %c0_i32_0 : i32, i32
  }
  func.func @transform_2(%arg0: i32) -> (i32, i32) {
    %c0_i32 = arith.constant 0 : i32
    %c0_i32_0 = arith.constant 0 : i32
    %c0_i32_1 = arith.constant 0 : i32
    return %c0_i32, %c0_i32_0 : i32, i32
  }
  func.func @transform_3(%arg0: i32) -> (i32, i32) {
    %c0_i32 = arith.constant 0 : i32
    %c0_i32_0 = arith.constant 0 : i32
    %c0_i32_1 = arith.constant 0 : i32
    return %c0_i32, %c0_i32_0 : i32, i32
  }
  func.func @transform_4(%arg0: i32) -> (i32, i32) {
    %c0_i32 = arith.constant 0 : i32
    %c0_i32_0 = arith.constant 0 : i32
    %c0_i32_1 = arith.constant 0 : i32
    return %c0_i32, %c0_i32_0 : i32, i32
  }
  func.func @transform_5(%arg0: i32) -> (i32, i32) {
    %c0_i32 = arith.constant 0 : i32
    %c0_i32_0 = arith.constant 0 : i32
    %c0_i32_1 = arith.constant 0 : i32
    return %c0_i32, %c0_i32_0 : i32, i32
  }
  func.func @transform_6(%arg0: i32) -> (i32, i32) {
    %c0_i32 = arith.constant 0 : i32
    %c0_i32_0 = arith.constant 0 : i32
    %c0_i32_1 = arith.constant 0 : i32
    return %c0_i32, %c0_i32_0 : i32, i32
  }
  func.func @transform_7(%arg0: i32) -> (i32, i32) {
    %c0_i32 = arith.constant 0 : i32
    %c0_i32_0 = arith.constant 0 : i32
    %c0_i32_1 = arith.constant 0 : i32
    return %c0_i32, %c0_i32_0 : i32, i32
  }
  func.func @transform_8(%arg0: i32) -> (i32, i32) {
    %c0_i32 = arith.constant 0 : i32
    %c0_i32_0 = arith.constant 0 : i32
    return %c0_i32, %arg0 : i32, i32
  }
}

</mosaic_0001>

<bundles_post_ra>
// kernel: tpu_custom_call.1
= control target key start
LH: loop header
LB: loop body
LE: loop exit
PB: predicated region body
PF: predicated region fallthrough
CT: control target
= control target key end

     0   :  { %14 = vsyncpa [#allocation6], 0  ;;  %s1449_s0 = inlined_call_operand.hbm [shape: f32[8,8,16], index: 0, kind: input, shape index: {}]   ;;  %s1450_s1 = inlined_call_operand.hbm [shape: f32[16,32], index: 1, kind: input, shape index: {}]   ;;  %s1451_s2 = inlined_call_operand.vmem [shape: f32[1,32], index: 2, kind: input, shape index: {}]   ;;  %s1452_s3 = inlined_call_operand.hbm [shape: f32[32,128], index: 3, kind: input, shape index: {}]   ;;  %s1453_s4 = inlined_call_operand.hbm [shape: f32[32,128], index: 4, kind: input, shape index: {}]   ;;  %s1454_s5 = inlined_call_operand.vmem [shape: f32[1,128], index: 5, kind: input, shape index: {}]   ;;  %s1455_s6 = inlined_call_operand.vmem [shape: f32[1,32], index: 6, kind: input, shape index: {}]   ;;  %s1456_s7 = inlined_call_operand.<no memory space> [shape: f32[1,1], index: 7, kind: input, shape index: {}]   ;;  %s1457_s8 = inlined_call_operand.hbm [shape: f32[8,8], index: 8, kind: output, shape index: {}]  }
   0x1   :  { %15 = vsyncpa [#allocation9], 0 }
   0x2   :  { %16 = vsyncpa [#allocation12], 0 }
   0x3   :  { %17 = vsyncpa [#allocation7], 0  ;;  %s35_s29 = sshll.u32 %s1450_s1, 4  ;;  %s1198_s30 = smov [#allocation8]   ;;  %s36_s29 = int_to_ptr.hbm [resolvable:$true] %s35_s29 }
   0x4   :  { %s37_s9 = sshll.u32 %s1198_s30, 4  ;;  %s22_s12 = sshll.u32 %s1449_s0, 4  ;;  %s38_s9 = int_to_ptr.vmem [resolvable:$true] %s37_s9  ;;  %s23_s12 = int_to_ptr.hbm [resolvable:$true] %s22_s12 }
   0x5   :  { %s1199_s13 = smov 128   ;;  %s1200_s14 = smov 8  }
   0x6   :  { %43 = dma.hbm_to_vmem [thread:$0]  %s36_s29, 256, %s38_s9, [#allocation9], %s1199_s13, %s1199_s13, %s1200_s14  }
   0x7   :  { %s1201_s15 = smov [#allocation5]   ;;  %s50_s19 = sshll.u32 %s1452_s3, 4  ;;  %s51_s19 = int_to_ptr.hbm [resolvable:$true] %s50_s19 }
   0x8   :  { %s24_s16 = sshll.u32 %s1201_s15, 4  ;;  %s63_s21 = sshll.u32 %s1453_s4, 4  ;;  %s25_s16 = int_to_ptr.vmem [resolvable:$true] %s24_s16  ;;  %s64_s21 = int_to_ptr.hbm [resolvable:$true] %s63_s21 }
   0x9   :  { %30 = dma.hbm_to_vmem [thread:$0]  %s23_s12, 1024, %s25_s16, [#allocation6], %s1199_s13, %s1199_s13, %s1200_s14  }
   0xa   :  { %s1202_s22 = smov [#allocation10]   ;;  %s1203_s0 = smov [#allocation11]  }
   0xb   :  { %s52_s23 = sshll.u32 %s1202_s22, 4  ;;  %s65_s24 = sshll.u32 %s1203_s0, 4  ;;  %s53_s23 = int_to_ptr.vmem [resolvable:$true] %s52_s23  ;;  %s66_s24 = int_to_ptr.vmem [resolvable:$true] %s65_s24 }
   0xc   :  { %58 = dma.hbm_to_vmem [thread:$0]  %s51_s19, 512, %s53_s23, [#allocation9], %s1199_s13, %s1199_s13, %s1200_s14  }
   0xd   :  { %71 = dma.hbm_to_vmem [thread:$0]  %s64_s21, 512, %s66_s24, [#allocation12], %s1199_s13, %s1199_s13, %s1200_s14  }
   0xe   :  { %1190 = dma.done.wait [#allocation6], 1024  }
   0xf   :  { %1191 = vsyncadd [#allocation6], 4294966272 }
  0x10   :  { %1192 = dma.done.wait [#allocation9], 768  }
  0x11   :  { %1193 = vsyncadd [#allocation9], 4294966528 }
  0x12   :  { %1194 = dma.done.wait [#allocation12], 512  }
  0x13   :  { %1195 = vsyncadd [#allocation12], 4294966784  ;;  %v103_v0 = vld [vmem:[#allocation8 + $0x8] sm:$0xff]  ;;  %v102_v1 = vld [vmem:[#allocation8] sm:$0xff]  ;;  %vm108_vm0 = vcmask 130048   ;;  %vm206_vm2 = vcmask 261120  }
  0x14   :  { %147 = vmatpush.msra.mxu0 %v103_v0  ;;  %v94_v2 = vld [vmem:[#allocation5] sm:$0xff]  ;;  %982 = vmatpush.msra.mxu3 %v103_v0  ;;  %v95_v3 = vld [vmem:[#allocation5 + $0x8] sm:$0xff]  ;;  %v96_v4 = vld [vmem:[#allocation5 + $0x10] sm:$0xff]  ;;  %v1204_v51 = vmov 0.0   ;;  %s1205_s26 = smov 64   ;;  %s1207_s29 = smov 96  }
  0x15   :  { %v101_v5 = vld [vmem:[#allocation5 + $0x38] sm:$0xff]  ;;  %v201_v6 = vld [vmem:[#allocation10 + $0x18] sm:$0xff]  ;;  %v98_v8 = vld [vmem:[#allocation5 + $0x20] sm:$0xff]  ;;  %s1208_s9 = smov [#allocation13]  }
  0x16   :  { %148 = vmatpush.msra.mxu0 %v102_v1  ;;  %983 = vmatpush.msra.mxu3 %v102_v1  ;;  %v97_v7 = vld [vmem:[#allocation5 + $0x18] sm:$0xff]  ;;  %v99_v9 = vld [vmem:[#allocation5 + $0x28] sm:$0xff]  ;;  %v100_v10 = vld [vmem:[#allocation5 + $0x30] sm:$0xff]  ;;  %s936_s10 = sshll.u32 %s1208_s9, 4  ;;  %s937_s10 = int_to_ptr.vmem [resolvable:$true] %s936_s10 }
  0x17   :  { %950 = vmatmul.msk.f32.vlgmr.msra.gmra.mxu0 %vm108_vm0, %v94_v2  ;;  %957 = vmatmul.msk.f32.vlgmr.msra.gmra.mxu3 %vm108_vm0, %v101_v5  ;;  %v200_v11 = vld [vmem:[#allocation10 + $0x10] sm:$0xff]  ;;  %v199_v12 = vld [vmem:[#allocation10 + $0x8] sm:$0xff]  ;;  %v198_v13 = vld [vmem:[#allocation10] sm:$0xff] }
  0x18   :  { %243 = vmatpush.msra.mxu1 %v201_v6  ;;  %984 = vmatpush.msra.mxu2 %v201_v6  ;;  %v999_v14 = vld [vmem:[%s1451_s2] ss:$0 sm:$0xff]  ;;  %v1280_v27 = vld [vmem:[#allocation11 + $0x18] sm:$0xff]  ;;  %v1282_v28 = vld [vmem:[#allocation11 + $0x10] sm:$0xff] }
  0x19   :  { %386 = vmatpush.msrb.mxu3 %v1280_v27  ;;  %v1289_v33 = vld [vmem:[#allocation11 + $0x8] sm:$0xff]  ;;  %v1291_v34 = vld [vmem:[#allocation11] sm:$0xff] }
  0x1a   :  { %244 = vmatpush.msra.mxu1 %v200_v11  ;;  %985 = vmatpush.msra.mxu2 %v200_v11  ;;  %v1316_v52 = vld [vmem:[%s1454_s5] ss:$0 sm:$0xff]  ;;  %s1206_s5 = smov 32  }
  0x1b   :  { %387 = vmatpush.msrb.mxu3 %v1282_v28 }
  0x1c   :  { %245 = vmatpush.msra.mxu1 %v199_v12  ;;  %986 = vmatpush.msra.mxu2 %v199_v12 }
  0x1d   :  { %388 = vmatpush.msrb.mxu3 %v1289_v33 }
  0x1e   :  { %246 = vmatpush.msra.mxu1 %v198_v13  ;;  %987 = vmatpush.msra.mxu2 %v198_v13 }
  0x1f   :  { %951 = vmatmul.msk.f32.gmra.mxu0 %vm108_vm0, %v95_v3  ;;  %389 = vmatpush.msrb.mxu3 %v1291_v34 }
  0x20   :  { %301 = vmatpush.msrb.mxu2 %v1280_v27 }
  0x21   :  { %540 = vmatpush.msra.mxu3 %v1280_v27 }
  0x22   :  { %302 = vmatpush.msrb.mxu2 %v1282_v28 }
  0x23   :  { %541 = vmatpush.msra.mxu3 %v1282_v28 }
  0x24   :  { %303 = vmatpush.msrb.mxu2 %v1289_v33 }
  0x25   :  { %542 = vmatpush.msra.mxu3 %v1289_v33 }
  0x26   :  { %304 = vmatpush.msrb.mxu2 %v1291_v34 }
  0x27   :  { %952 = vmatmul.msk.f32.gmra.mxu0 %vm108_vm0, %v96_v4  ;;  %543 = vmatpush.msra.mxu3 %v1291_v34 }
  0x2f   :  { %953 = vmatmul.msk.f32.gmra.mxu0 %vm108_vm0, %v97_v7 }
  0x37   :  { %954 = vmatmul.msk.f32.gmra.mxu0 %vm108_vm0, %v98_v8 }
  0x3f   :  { %955 = vmatmul.msk.f32.gmra.mxu0 %vm108_vm0, %v99_v9 }
  0x47   :  { %956 = vmatmul.msk.f32.gmra.mxu0 %vm108_vm0, %v100_v10 }
  0x94   :  { %v150_v15 = vpop.f32.mrf.mxu0 }
  0x95   :  { %v151_v16 = vadd.f32 %v999_v14, %v150_v15 }
  0x97   :  { %v182_v17 = vmul.f32 0.1, %v151_v16  ;;  %vm174_vm1 = vcmp.gt.f32.partialorder %v151_v16, 0.0 }
  0x99   :  { %v190_v18 = vsel %vm174_vm1, %v151_v16, %v182_v17 }
  0x9a   :  { %958 = vmatmul.msk.f32.vlgmr.msra.gmra.mxu1 %vm206_vm2, %v190_v18  ;;  %v171_v45 = vpop.f32.mrf.mxu3 }
  0x9b   :  { %v172_v47 = vadd.f32 %v999_v14, %v171_v45 }
  0x9c   :  { %v153_v19 = vpop.f32.mrf.mxu0 }
  0x9d   :  { %v154_v20 = vadd.f32 %v999_v14, %v153_v19  ;;  %v189_v49 = vmul.f32 0.1, %v172_v47  ;;  %vm181_vm9 = vcmp.gt.f32.partialorder %v172_v47, 0.0 }
  0x9f   :  { %v183_v21 = vmul.f32 0.1, %v154_v20  ;;  %vm175_vm3 = vcmp.gt.f32.partialorder %v154_v20, 0.0  ;;  %v197_v50 = vsel %vm181_vm9, %v172_v47, %v189_v49 }
  0xa1   :  { %v191_v22 = vsel %vm175_vm3, %v154_v20, %v183_v21 }
  0xa2   :  { %959 = vmatmul.msk.f32.gmra.mxu1 %vm206_vm2, %v191_v22 }
  0xa4   :  { %v156_v23 = vpop.f32.mrf.mxu0 }
  0xa5   :  { %v157_v24 = vadd.f32 %v999_v14, %v156_v23 }
  0xa7   :  { %v184_v25 = vmul.f32 0.1, %v157_v24  ;;  %vm176_vm4 = vcmp.gt.f32.partialorder %v157_v24, 0.0 }
  0xa9   :  { %v192_v26 = vsel %vm176_vm4, %v157_v24, %v184_v25 }
  0xaa   :  { %960 = vmatmul.msk.f32.gmra.mxu1 %vm206_vm2, %v192_v26 }
  0xac   :  { %v159_v29 = vpop.f32.mrf.mxu0 }
  0xad   :  { %v160_v30 = vadd.f32 %v999_v14, %v159_v29 }
  0xaf   :  { %v185_v31 = vmul.f32 0.1, %v160_v30  ;;  %vm177_vm5 = vcmp.gt.f32.partialorder %v160_v30, 0.0 }
  0xb1   :  { %v193_v32 = vsel %vm177_vm5, %v160_v30, %v185_v31 }
  0xb2   :  { %961 = vmatmul.msk.f32.gmra.mxu1 %vm206_vm2, %v193_v32 }
  0xb4   :  { %v162_v35 = vpop.f32.mrf.mxu0 }
  0xb5   :  { %v163_v36 = vadd.f32 %v999_v14, %v162_v35 }
  0xb7   :  { %v186_v37 = vmul.f32 0.1, %v163_v36  ;;  %vm178_vm6 = vcmp.gt.f32.partialorder %v163_v36, 0.0 }
  0xb9   :  { %v194_v38 = vsel %vm178_vm6, %v163_v36, %v186_v37 }
  0xba   :  { %962 = vmatmul.msk.f32.gmra.mxu1 %vm206_vm2, %v194_v38 }
  0xbc   :  { %v165_v39 = vpop.f32.mrf.mxu0 }
  0xbd   :  { %v166_v40 = vadd.f32 %v999_v14, %v165_v39 }
  0xbf   :  { %v187_v41 = vmul.f32 0.1, %v166_v40  ;;  %vm179_vm7 = vcmp.gt.f32.partialorder %v166_v40, 0.0 }
  0xc1   :  { %v195_v42 = vsel %vm179_vm7, %v166_v40, %v187_v41 }
  0xc2   :  { %963 = vmatmul.msk.f32.gmra.mxu1 %vm206_vm2, %v195_v42 }
  0xc4   :  { %v168_v43 = vpop.f32.mrf.mxu0 }
  0xc5   :  { %v169_v44 = vadd.f32 %v999_v14, %v168_v43 }
  0xc7   :  { %v188_v46 = vmul.f32 0.1, %v169_v44  ;;  %vm180_vm8 = vcmp.gt.f32.partialorder %v169_v44, 0.0 }
  0xc9   :  { %v196_v48 = vsel %vm180_vm8, %v169_v44, %v188_v46 }
  0xca   :  { %964 = vmatmul.msk.f32.vlgmr.msra.gmra.mxu2 %vm206_vm2, %v196_v48 }
  0xcb   :  { %463 = vmatpush.msra.mxu2 %v1280_v27 }
  0xcd   :  { %464 = vmatpush.msra.mxu2 %v1282_v28 }
  0xcf   :  { %465 = vmatpush.msra.mxu2 %v1289_v33 }
  0xd1   :  { %466 = vmatpush.msra.mxu2 %v1291_v34 }
  0xd2   :  { %965 = vmatmul.msk.f32.gmra.mxu2 %vm206_vm2, %v197_v50 }
  0xda   :  { %305 = vmatmul.f32.vlgmr.msrb.gmra.mxu2 %v1204_v51 }
  0xdb   :  { %617 = vmatpush.msrb.mxu2 %v1280_v27 }
  0xdd   :  { %618 = vmatpush.msrb.mxu2 %v1282_v28 }
  0xdf   :  { %619 = vmatpush.msrb.mxu2 %v1289_v33 }
  0xe1   :  { %620 = vmatpush.msrb.mxu2 %v1291_v34 }
 0x117   :  { %v248_v57 = vpop.f32.mrf.mxu1 }
 0x118   :  { %v249_v58 = vadd.f32 %v1316_v52, %v248_v57 }
 0x11f   :  { %v251_v20 = vpop.f32.mrf.mxu1 }
 0x120   :  { %v252_v21 = vadd.f32 %v1316_v52, %v251_v20 }
 0x127   :  { %v254_v51 = vpop.f32.mrf.mxu1 }
 0x14d   :  { %v266_v53 = vpop.f32.mrf.mxu2 }
 0x14e   :  { %v1319_v54 = vadd.f32 %v1316_v52, %v266_v53  ;;  %v255_v53 = vadd.f32 %v1316_v52, %v254_v51 }
 0x155   :  { %v269_v55 = vpop.f32.mrf.mxu2 }
 0x156   :  { %v1322_v56 = vadd.f32 %v1316_v52, %v269_v55 }
 0x15d   :  { %v306_v59 = vpop.f32.mrf.mxu2 }
 0x15e   :  { %v309_v60 = vadd.f32 %v306_v59, %v249_v58 }
 0x160   :  { %1002 = vtanh.f32 %v309_v60  ;;  %v966_v62 = vmul.f32 -1.442695, %v309_v60 }
 0x162   :  { %1004 = vpow2.f32 %v966_v62 }
 0x166   :  { %v1003_v61 = vpop.eup %1002 }
 0x167   :  { %332 = vrot.lane.b32.xlu0 %v1003_v61, %s1205_s26 }
 0x168   :  { %v1005_v63 = vpop.eup %1004 }
 0x169   :  { %v313_v0 = vadd.f32 1.0, %v1005_v63 }
 0x16b   :  { %1006 = vrcp.f32 %v313_v0  ;;  %v325_v6 = vand.u32 2147483648, %v313_v0  ;;  %vm319_vm11 = vweird.f32 %v313_v0  ;;  %v323_v7 = vand.u32 2147483647, %v313_v0 }
 0x16d   :  { %v326_v9 = vor.u32 1.1754944e-38, %v325_v6  ;;  %vm324_vm13 = vcmp.eq.f32.partialorder %v323_v7, 8.507059e+37 }
 0x171   :  { %v1007_v1 = vpop.eup %1006 }
 0x172   :  { %v315_v2 = vmul.f32 %v1007_v1, %v313_v0  ;;  %vm320_vm10 = vweird.f32 %v1007_v1 }
 0x173   :  { %vm321_vm12 = vmor %vm319_vm11, %vm320_vm10 }
 0x174   :  { %v316_v3 = vsub.f32 1.0, %v315_v2 }
 0x176   :  { %v317_v4 = vmul.f32 %v1007_v1, %v316_v3 }
 0x178   :  { %v318_v5 = vadd.f32 %v1007_v1, %v317_v4 }
 0x17a   :  { %v322_v8 = vsel %vm321_vm12, %v1007_v1, %v318_v5 }
 0x17b   :  { %v327_v11 = vsel %vm324_vm13, %v326_v9, %v322_v8 }
 0x17c   :  { %v330_v13 = vmul.f32 0.0, %v327_v11 }
 0x1d9   :  { %v333_v10 = vpop.permute.xlu0 %332 }
 0x1da   :  { %v335_v12 = vmul.f32 %v333_v10, %v327_v11 }
 0x1dc   :  { %337 = vrot.lane.b32.xlu0 %v335_v12, %s1206_s5 }
 0x24e   :  { %v338_v14 = vpop.permute.xlu0 %337 }
 0x24f   :  { %v340_v15 = vadd.f32 %v338_v14, %v330_v13 }
 0x251   :  { %1008 = vtanh.f32 %v340_v15 }
 0x257   :  { %v1009_v16 = vpop.eup %1008 }
 0x258   :  { %343 = vrot.lane.b32.xlu1 %v1009_v16, %s1205_s26 }
 0x2ca   :  { %v344_v17 = vpop.permute.xlu1 %343 }
 0x2cb   :  { %v1328_v18 = vmul.f32 %v344_v17, %v327_v11  ;;  %v257_v17 = vpop.f32.mrf.mxu1 }
 0x2cd   :  { %370 = vrot.lane.b32.xlu1 %v1328_v18, %s1206_s5 }
 0x33f   :  { %v371_v19 = vpop.permute.xlu1 %370 }
 0x340   :  { %967 = vmatmul.msk.f32.vlgmr.msrb.gmra.mxu3 %vm206_vm2, %v371_v19  ;;  %v258_v19 = vadd.f32 %v1316_v52, %v257_v17 }
 0x341   :  { %694 = vmatpush.msrb.mxu3 %v1280_v27 }
 0x343   :  { %695 = vmatpush.msrb.mxu3 %v1282_v28 }
 0x345   :  { %696 = vmatpush.msrb.mxu3 %v1289_v33 }
 0x347   :  { %697 = vmatpush.msrb.mxu3 %v1291_v34 }
 0x3c3   :  { %v391_v22 = vpop.f32.mrf.mxu3 }
 0x3c4   :  { %v394_v23 = vadd.f32 %v391_v22, %v252_v21 }
 0x3c6   :  { %1010 = vtanh.f32 %v394_v23  ;;  %v968_v25 = vmul.f32 -1.442695, %v394_v23 }
 0x3c8   :  { %1012 = vpow2.f32 %v968_v25 }
 0x3cc   :  { %v1011_v24 = vpop.eup %1010 }
 0x3cd   :  { %417 = vrot.lane.b32.xlu2 %v1011_v24, %s1205_s26 }
 0x3ce   :  { %v1013_v26 = vpop.eup %1012 }
 0x3cf   :  { %v398_v29 = vadd.f32 1.0, %v1013_v26 }
 0x3d1   :  { %1014 = vrcp.f32 %v398_v29  ;;  %v410_v37 = vand.u32 2147483648, %v398_v29  ;;  %vm404_vm15 = vweird.f32 %v398_v29  ;;  %v408_v38 = vand.u32 2147483647, %v398_v29 }
 0x3d3   :  { %v411_v40 = vor.u32 1.1754944e-38, %v410_v37  ;;  %vm409_vm1 = vcmp.eq.f32.partialorder %v408_v38, 8.507059e+37 }
 0x3d7   :  { %v1015_v30 = vpop.eup %1014 }
 0x3d8   :  { %v400_v31 = vmul.f32 %v1015_v30, %v398_v29  ;;  %vm405_vm14 = vweird.f32 %v1015_v30 }
 0x3d9   :  { %vm406_vm0 = vmor %vm404_vm15, %vm405_vm14 }
 0x3da   :  { %v401_v32 = vsub.f32 1.0, %v400_v31 }
 0x3dc   :  { %v402_v35 = vmul.f32 %v1015_v30, %v401_v32 }
 0x3de   :  { %v403_v36 = vadd.f32 %v1015_v30, %v402_v35 }
 0x3e0   :  { %v407_v39 = vsel %vm406_vm0, %v1015_v30, %v403_v36 }
 0x3e1   :  { %v412_v42 = vsel %vm409_vm1, %v411_v40, %v407_v39 }
 0x3e2   :  { %v415_v44 = vmul.f32 %v412_v42, %v340_v15 }
 0x427   :  { %v418_v41 = vpop.permute.xlu2 %417 }
 0x428   :  { %v420_v43 = vmul.f32 %v418_v41, %v412_v42 }
 0x42a   :  { %422 = vrot.lane.b32.xlu2 %v420_v43, %s1206_s5 }
 0x484   :  { %v423_v45 = vpop.permute.xlu2 %422 }
 0x485   :  { %v425_v46 = vadd.f32 %v423_v45, %v415_v44  ;;  %v260_v45 = vpop.f32.mrf.mxu1 }
 0x487   :  { %1016 = vtanh.f32 %v425_v46 }
 0x48d   :  { %v1017_v47 = vpop.eup %1016 }
 0x48e   :  { %428 = vrot.lane.b32.xlu0 %v1017_v47, %s1205_s26 }
 0x500   :  { %v429_v48 = vpop.permute.xlu0 %428 }
 0x501   :  { %v1341_v49 = vmul.f32 %v429_v48, %v412_v42 }
 0x503   :  { %447 = vrot.lane.b32.xlu1 %v1341_v49, %s1206_s5 }
 0x575   :  { %v448_v50 = vpop.permute.xlu1 %447 }
 0x576   :  { %969 = vmatmul.msk.f32.vlgmr.msra.gmra.mxu2 %vm206_vm2, %v448_v50 }
 0x577   :  { %771 = vmatpush.msra.mxu2 %v1280_v27 }
 0x579   :  { %772 = vmatpush.msra.mxu2 %v1282_v28 }
 0x57b   :  { %773 = vmatpush.msra.mxu2 %v1289_v33 }
 0x57d   :  { %774 = vmatpush.msra.mxu2 %v1291_v34 }
 0x5f9   :  { %v468_v55 = vpop.f32.mrf.mxu2 }
 0x5fa   :  { %v471_v57 = vadd.f32 %v468_v55, %v255_v53 }
 0x5fc   :  { %1018 = vtanh.f32 %v471_v57  ;;  %v970_v59 = vmul.f32 -1.442695, %v471_v57 }
 0x5fe   :  { %1020 = vpow2.f32 %v970_v59 }
 0x602   :  { %v1019_v58 = vpop.eup %1018 }
 0x603   :  { %494 = vrot.lane.b32.xlu2 %v1019_v58, %s1205_s26 }
 0x604   :  { %v1021_v60 = vpop.eup %1020 }
 0x605   :  { %v475_v61 = vadd.f32 1.0, %v1021_v60 }
 0x607   :  { %1022 = vrcp.f32 %v475_v61  ;;  %v487_v3 = vand.u32 2147483648, %v475_v61  ;;  %vm481_vm4 = vweird.f32 %v475_v61  ;;  %v485_v4 = vand.u32 2147483647, %v475_v61 }
 0x609   :  { %v488_v6 = vor.u32 1.1754944e-38, %v487_v3  ;;  %vm486_vm6 = vcmp.eq.f32.partialorder %v485_v4, 8.507059e+37 }
 0x60d   :  { %v1023_v62 = vpop.eup %1022 }
 0x60e   :  { %v477_v63 = vmul.f32 %v1023_v62, %v475_v61  ;;  %vm482_vm3 = vweird.f32 %v1023_v62 }
 0x60f   :  { %vm483_vm5 = vmor %vm481_vm4, %vm482_vm3 }
 0x610   :  { %v478_v0 = vsub.f32 1.0, %v477_v63 }
 0x612   :  { %v479_v1 = vmul.f32 %v1023_v62, %v478_v0 }
 0x614   :  { %v480_v2 = vadd.f32 %v1023_v62, %v479_v1 }
 0x616   :  { %v484_v5 = vsel %vm483_vm5, %v1023_v62, %v480_v2 }
 0x617   :  { %v489_v8 = vsel %vm486_vm6, %v488_v6, %v484_v5 }
 0x618   :  { %v492_v10 = vmul.f32 %v489_v8, %v425_v46  ;;  %v261_v46 = vadd.f32 %v1316_v52, %v260_v45 }
 0x65d   :  { %v495_v7 = vpop.permute.xlu2 %494 }
 0x65e   :  { %v497_v9 = vmul.f32 %v495_v7, %v489_v8 }
 0x660   :  { %499 = vrot.lane.b32.xlu0 %v497_v9, %s1206_s5 }
 0x6d2   :  { %v500_v11 = vpop.permute.xlu0 %499 }
 0x6d3   :  { %v502_v12 = vadd.f32 %v500_v11, %v492_v10 }
 0x6d5   :  { %1024 = vtanh.f32 %v502_v12 }
 0x6db   :  { %v1025_v13 = vpop.eup %1024 }
 0x6dc   :  { %505 = vrot.lane.b32.xlu1 %v1025_v13, %s1205_s26 }
 0x74e   :  { %v506_v14 = vpop.permute.xlu1 %505 }
 0x74f   :  { %v1354_v15 = vmul.f32 %v506_v14, %v489_v8 }
 0x751   :  { %524 = vrot.lane.b32.xlu2 %v1354_v15, %s1206_s5 }
 0x7ab   :  { %v525_v16 = vpop.permute.xlu2 %524 }
 0x7ac   :  { %971 = vmatmul.msk.f32.vlgmr.msra.gmra.mxu3 %vm206_vm2, %v525_v16 }
 0x7ad   :  { %848 = vmatpush.msra.mxu3 %v1280_v27 }
 0x7af   :  { %849 = vmatpush.msra.mxu3 %v1282_v28 }
 0x7b1   :  { %850 = vmatpush.msra.mxu3 %v1289_v33 }
 0x7b3   :  { %851 = vmatpush.msra.mxu3 %v1291_v34 }
 0x82f   :  { %v545_v20 = vpop.f32.mrf.mxu3 }
 0x830   :  { %v548_v21 = vadd.f32 %v545_v20, %v258_v19 }
 0x832   :  { %1026 = vtanh.f32 %v548_v21  ;;  %v972_v23 = vmul.f32 -1.442695, %v548_v21 }
 0x834   :  { %1028 = vpow2.f32 %v972_v23 }
 0x838   :  { %v1027_v22 = vpop.eup %1026 }
 0x839   :  { %571 = vrot.lane.b32.xlu0 %v1027_v22, %s1205_s26 }
 0x83a   :  { %v1029_v24 = vpop.eup %1028 }
 0x83b   :  { %v552_v25 = vadd.f32 1.0, %v1029_v24 }
 0x83d   :  { %1030 = vrcp.f32 %v552_v25  ;;  %v564_v34 = vand.u32 2147483648, %v552_v25  ;;  %vm558_vm8 = vweird.f32 %v552_v25  ;;  %v562_v30 = vand.u32 2147483647, %v552_v25 }
 0x83f   :  { %v565_v32 = vor.u32 1.1754944e-38, %v564_v34  ;;  %vm563_vm10 = vcmp.eq.f32.partialorder %v562_v30, 8.507059e+37 }
 0x843   :  { %v1031_v27 = vpop.eup %1030 }
 0x844   :  { %v554_v28 = vmul.f32 %v1031_v27, %v552_v25  ;;  %vm559_vm7 = vweird.f32 %v1031_v27 }
 0x845   :  { %vm560_vm9 = vmor %vm558_vm8, %vm559_vm7 }
 0x846   :  { %v555_v26 = vsub.f32 1.0, %v554_v28 }
 0x848   :  { %v556_v33 = vmul.f32 %v1031_v27, %v555_v26 }
 0x84a   :  { %v557_v29 = vadd.f32 %v1031_v27, %v556_v33 }
 0x84c   :  { %v561_v31 = vsel %vm560_vm9, %v1031_v27, %v557_v29 }
 0x84d   :  { %v566_v36 = vsel %vm563_vm10, %v565_v32, %v561_v31 }
 0x84e   :  { %v569_v38 = vmul.f32 %v566_v36, %v502_v12  ;;  %v263_v12 = vpop.f32.mrf.mxu1 }
 0x84f   :  { %v264_v13 = vadd.f32 %v1316_v52, %v263_v12 }
 0x8ab   :  { %v572_v35 = vpop.permute.xlu0 %571 }
 0x8ac   :  { %v574_v37 = vmul.f32 %v572_v35, %v566_v36 }
 0x8ae   :  { %576 = vrot.lane.b32.xlu1 %v574_v37, %s1206_s5 }
 0x920   :  { %v577_v39 = vpop.permute.xlu1 %576 }
 0x921   :  { %v579_v40 = vadd.f32 %v577_v39, %v569_v38 }
 0x923   :  { %1032 = vtanh.f32 %v579_v40 }
 0x929   :  { %v1033_v41 = vpop.eup %1032 }
 0x92a   :  { %582 = vrot.lane.b32.xlu2 %v1033_v41, %s1205_s26 }
 0x984   :  { %v583_v42 = vpop.permute.xlu2 %582 }
 0x985   :  { %v1367_v43 = vmul.f32 %v583_v42, %v566_v36 }
 0x987   :  { %601 = vrot.lane.b32.xlu0 %v1367_v43, %s1206_s5 }
 0x9f9   :  { %v602_v44 = vpop.permute.xlu0 %601 }
 0x9fa   :  { %973 = vmatmul.msk.f32.vlgmr.msrb.gmra.mxu2 %vm206_vm2, %v602_v44 }
 0xa7d   :  { %v622_v47 = vpop.f32.mrf.mxu2 }
 0xa7e   :  { %v625_v48 = vadd.f32 %v622_v47, %v261_v46 }
 0xa80   :  { %1034 = vtanh.f32 %v625_v48  ;;  %v974_v51 = vmul.f32 -1.442695, %v625_v48 }
 0xa82   :  { %1036 = vpow2.f32 %v974_v51 }
 0xa86   :  { %v1035_v50 = vpop.eup %1034 }
 0xa87   :  { %648 = vrot.lane.b32.xlu1 %v1035_v50, %s1205_s26 }
 0xa88   :  { %v1037_v53 = vpop.eup %1036 }
 0xa89   :  { %v629_v55 = vadd.f32 1.0, %v1037_v53 }
 0xa8b   :  { %1038 = vrcp.f32 %v629_v55  ;;  %v641_v62 = vand.u32 2147483648, %v629_v55  ;;  %vm635_vm12 = vweird.f32 %v629_v55  ;;  %v639_v63 = vand.u32 2147483647, %v629_v55 }
 0xa8d   :  { %v642_v1 = vor.u32 1.1754944e-38, %v641_v62  ;;  %vm640_vm14 = vcmp.eq.f32.partialorder %v639_v63, 8.507059e+37 }
 0xa91   :  { %v1039_v57 = vpop.eup %1038 }
 0xa92   :  { %v631_v58 = vmul.f32 %v1039_v57, %v629_v55  ;;  %vm636_vm11 = vweird.f32 %v1039_v57 }
 0xa93   :  { %vm637_vm13 = vmor %vm635_vm12, %vm636_vm11  ;;  %vm365_vm12 = vcmask 57344  }
 0xa94   :  { %v632_v59 = vsub.f32 1.0, %v631_v58 }
 0xa96   :  { %v633_v60 = vmul.f32 %v1039_v57, %v632_v59 }
 0xa98   :  { %v634_v61 = vadd.f32 %v1039_v57, %v633_v60 }
 0xa9a   :  { %v638_v0 = vsel %vm637_vm13, %v1039_v57, %v634_v61 }
 0xa9b   :  { %v643_v3 = vsel %vm640_vm14, %v642_v1, %v638_v0 }
 0xa9c   :  { %v646_v5 = vmul.f32 %v643_v3, %v579_v40 }
 0xaf9   :  { %v649_v2 = vpop.permute.xlu1 %648 }
 0xafa   :  { %v651_v4 = vmul.f32 %v649_v2, %v643_v3 }
 0xafc   :  { %653 = vrot.lane.b32.xlu2 %v651_v4, %s1206_s5  ;;  %v1001_v4 = vld [vmem:[%s1455_s6] ss:$0 sm:$0xff] }
 0xb56   :  { %v654_v6 = vpop.permute.xlu2 %653 }
 0xb57   :  { %v656_v7 = vadd.f32 %v654_v6, %v646_v5 }
 0xb59   :  { %1040 = vtanh.f32 %v656_v7 }
 0xb5f   :  { %v1041_v8 = vpop.eup %1040 }
 0xb60   :  { %659 = vrot.lane.b32.xlu0 %v1041_v8, %s1205_s26 }
 0xbd2   :  { %v660_v9 = vpop.permute.xlu0 %659 }
 0xbd3   :  { %v1376_v10 = vmul.f32 %v660_v9, %v643_v3 }
 0xbd5   :  { %678 = vrot.lane.b32.xlu1 %v1376_v10, %s1206_s5 }
 0xc47   :  { %v679_v11 = vpop.permute.xlu1 %678 }
 0xc48   :  { %975 = vmatmul.msk.f32.vlgmr.msrb.gmra.mxu3 %vm206_vm2, %v679_v11 }
 0xccb   :  { %v699_v14 = vpop.f32.mrf.mxu3 }
 0xccc   :  { %v702_v16 = vadd.f32 %v699_v14, %v264_v13 }
 0xcce   :  { %1042 = vtanh.f32 %v702_v16  ;;  %v976_v19 = vmul.f32 -1.442695, %v702_v16 }
 0xcd0   :  { %1044 = vpow2.f32 %v976_v19 }
 0xcd4   :  { %v1043_v17 = vpop.eup %1042 }
 0xcd5   :  { %725 = vrot.lane.b32.xlu2 %v1043_v17, %s1205_s26 }
 0xcd6   :  { %v1045_v20 = vpop.eup %1044 }
 0xcd7   :  { %v706_v21 = vadd.f32 1.0, %v1045_v20 }
 0xcd9   :  { %1046 = vrcp.f32 %v706_v21  ;;  %v718_v28 = vand.u32 2147483648, %v706_v21  ;;  %vm712_vm0 = vweird.f32 %v706_v21  ;;  %v716_v52 = vand.u32 2147483647, %v706_v21 }
 0xcdb   :  { %v719_v33 = vor.u32 1.1754944e-38, %v718_v28  ;;  %vm717_vm3 = vcmp.eq.f32.partialorder %v716_v52, 8.507059e+37 }
 0xcdf   :  { %v1047_v22 = vpop.eup %1046 }
 0xce0   :  { %v708_v23 = vmul.f32 %v1047_v22, %v706_v21  ;;  %vm713_vm15 = vweird.f32 %v1047_v22 }
 0xce1   :  { %vm714_vm1 = vmor %vm712_vm0, %vm713_vm15  ;;  %vm929_vm15 = vcmask 64512  }
 0xce2   :  { %v709_v24 = vsub.f32 1.0, %v708_v23 }
 0xce4   :  { %v710_v25 = vmul.f32 %v1047_v22, %v709_v24 }
 0xce6   :  { %v711_v27 = vadd.f32 %v1047_v22, %v710_v25 }
 0xce8   :  { %v715_v26 = vsel %vm714_vm1, %v1047_v22, %v711_v27 }
 0xce9   :  { %v720_v34 = vsel %vm717_vm3, %v719_v33, %v715_v26 }
 0xcea   :  { %v723_v31 = vmul.f32 %v720_v34, %v656_v7 }
 0xd2f   :  { %v726_v29 = vpop.permute.xlu2 %725 }
 0xd30   :  { %v728_v30 = vmul.f32 %v726_v29, %v720_v34 }
 0xd32   :  { %730 = vrot.lane.b32.xlu0 %v728_v30, %s1206_s5 }
 0xda4   :  { %v731_v32 = vpop.permute.xlu0 %730 }
 0xda5   :  { %v733_v35 = vadd.f32 %v731_v32, %v723_v31 }
 0xda7   :  { %1048 = vtanh.f32 %v733_v35 }
 0xdad   :  { %v1049_v36 = vpop.eup %1048 }
 0xdae   :  { %736 = vrot.lane.b32.xlu1 %v1049_v36, %s1205_s26 }
 0xe20   :  { %v737_v37 = vpop.permute.xlu1 %736 }
 0xe21   :  { %v739_v38 = vmul.f32 %v737_v37, %v720_v34 }
 0xe23   :  { %755 = vrot.lane.b32.xlu2 %v739_v38, %s1206_s5 }
 0xe7d   :  { %v756_v39 = vpop.permute.xlu2 %755 }
 0xe7e   :  { %977 = vmatmul.msk.f32.vlgmr.msra.gmra.mxu2 %vm206_vm2, %v756_v39 }
 0xf01   :  { %v776_v40 = vpop.f32.mrf.mxu2 }
 0xf02   :  { %v779_v41 = vadd.f32 %v776_v40, %v1319_v54 }
 0xf04   :  { %1050 = vtanh.f32 %v779_v41  ;;  %v978_v44 = vmul.f32 -1.442695, %v779_v41 }
 0xf06   :  { %1052 = vpow2.f32 %v978_v44  ;;  %v361_v44 = vlaneseq }
 0xf0a   :  { %v1051_v42 = vpop.eup %1050 }
 0xf0b   :  { %802 = vrot.lane.b32.xlu0 %v1051_v42, %s1205_s26 }
 0xf0c   :  { %v1053_v45 = vpop.eup %1052 }
 0xf0d   :  { %v783_v46 = vadd.f32 1.0, %v1053_v45  ;;  %v362_v45 = vand.u32 127, %v361_v44 }
 0xf0f   :  { %1054 = vrcp.f32 %v783_v46  ;;  %v795_v55 = vand.u32 2147483648, %v783_v46  ;;  %vm789_vm5 = vweird.f32 %v783_v46  ;;  %v793_v57 = vand.u32 2147483647, %v783_v46 }
 0xf11   :  { %v796_v58 = vor.u32 1.1754944e-38, %v795_v55  ;;  %vm794_vm7 = vcmp.eq.f32.partialorder %v793_v57, 8.507059e+37 }
 0xf15   :  { %v1055_v47 = vpop.eup %1054 }
 0xf16   :  { %v785_v48 = vmul.f32 %v1055_v47, %v783_v46  ;;  %vm790_vm4 = vweird.f32 %v1055_v47 }
 0xf17   :  { %vm791_vm6 = vmor %vm789_vm5, %vm790_vm4 }
 0xf18   :  { %v786_v50 = vsub.f32 1.0, %v785_v48 }
 0xf1a   :  { %v787_v51 = vmul.f32 %v1055_v47, %v786_v50 }
 0xf1c   :  { %v788_v53 = vadd.f32 %v1055_v47, %v787_v51 }
 0xf1e   :  { %v792_v54 = vsel %vm791_vm6, %v1055_v47, %v788_v53 }
 0xf1f   :  { %v797_v60 = vsel %vm794_vm7, %v796_v58, %v792_v54 }
 0xf20   :  { %v800_v62 = vmul.f32 %v797_v60, %v733_v35 }
 0xf7d   :  { %v803_v59 = vpop.permute.xlu0 %802 }
 0xf7e   :  { %v805_v61 = vmul.f32 %v803_v59, %v797_v60 }
 0xf80   :  { %807 = vrot.lane.b32.xlu1 %v805_v61, %s1206_s5 }
 0xff2   :  { %v808_v63 = vpop.permute.xlu1 %807 }
 0xff3   :  { %v1390_v0 = vadd.f32 %v808_v63, %v800_v62 }
 0xff5   :  { %1056 = vtanh.f32 %v1390_v0 }
 0xffb   :  { %v1057_v1 = vpop.eup %1056 }
 0xffc   :  { %813 = vrot.lane.b32.xlu2 %v1057_v1, %s1205_s26 }
0x1056   :  { %v814_v2 = vpop.permute.xlu2 %813 }
0x1057   :  { %v816_v3 = vmul.f32 %v814_v2, %v797_v60 }
0x1059   :  { %832 = vrot.lane.b32.xlu0 %v816_v3, %s1206_s5 }
0x1061   :  { %349 = vrot.lane.b32.xlu0 %v1001_v4, %s1207_s29 }
0x10cb   :  { %v833_v5 = vpop.permute.xlu0 %832 }
0x10cc   :  { %979 = vmatmul.msk.f32.vlgmr.msra.gmra.mxu3 %vm206_vm2, %v833_v5 }
0x10d3   :  { %v1401_v9 = vpop.permute.xlu0 %349 }
0x10d4   :  { %v352_v11 = vmul.f32 %v1401_v9, %v1328_v18  ;;  %v432_v12 = vmul.f32 %v1341_v49, %v1401_v9  ;;  %v509_v13 = vmul.f32 %v1354_v15, %v1401_v9  ;;  %v663_v18 = vmul.f32 %v1376_v10, %v1401_v9 }
0x10d5   :  { %v740_v14 = vmul.f32 %v739_v38, %v1401_v9  ;;  %v817_v49 = vmul.f32 %v816_v3, %v1401_v9 }
0x114f   :  { %v853_v6 = vpop.f32.mrf.mxu3 }
0x1150   :  { %v856_v7 = vadd.f32 %v853_v6, %v1322_v56  ;;  %v586_v56 = vmul.f32 %v1367_v43, %v1401_v9 }
0x1152   :  { %1058 = vtanh.f32 %v856_v7  ;;  %v980_v15 = vmul.f32 -1.442695, %v856_v7 }
0x1154   :  { %1060 = vpow2.f32 %v980_v15 }
0x1158   :  { %v1059_v8 = vpop.eup %1058 }
0x1159   :  { %879 = vrot.lane.b32.xlu1 %v1059_v8, %s1205_s26 }
0x115a   :  { %v1061_v16 = vpop.eup %1060 }
0x115b   :  { %v860_v17 = vadd.f32 1.0, %v1061_v16 }
0x115d   :  { %1062 = vrcp.f32 %v860_v17  ;;  %v872_v22 = vand.u32 2147483648, %v860_v17  ;;  %vm866_vm9 = vweird.f32 %v860_v17  ;;  %v870_v23 = vand.u32 2147483647, %v860_v17 }
0x115f   :  { %v873_v25 = vor.u32 1.1754944e-38, %v872_v22  ;;  %vm871_vm11 = vcmp.eq.f32.partialorder %v870_v23, 8.507059e+37 }
0x1161   :  { %354 = vrot.lane.b32.xlu1 %v352_v11, %s1206_s5 }
0x1163   :  { %v1063_v43 = vpop.eup %1062 }
0x1164   :  { %v862_v19 = vmul.f32 %v1063_v43, %v860_v17  ;;  %vm867_vm8 = vweird.f32 %v1063_v43 }
0x1165   :  { %vm868_vm10 = vmor %vm866_vm9, %vm867_vm8 }
0x1166   :  { %v863_v20 = vsub.f32 1.0, %v862_v19 }
0x1168   :  { %v864_v21 = vmul.f32 %v1063_v43, %v863_v20 }
0x1169   :  { %434 = vrot.lane.b32.xlu1 %v432_v12, %s1206_s5 }
0x116a   :  { %v865_v10 = vadd.f32 %v1063_v43, %v864_v21 }
0x116c   :  { %v869_v24 = vsel %vm868_vm10, %v1063_v43, %v865_v10 }
0x116d   :  { %v874_v28 = vsel %vm871_vm11, %v873_v25, %v869_v24 }
0x116e   :  { %v877_v39 = vmul.f32 %v874_v28, %v1390_v0 }
0x1171   :  { %511 = vrot.lane.b32.xlu1 %v509_v13, %s1206_s5 }
0x1179   :  { %588 = vrot.lane.b32.xlu1 %v586_v56, %s1206_s5 }
0x1181   :  { %665 = vrot.lane.b32.xlu1 %v663_v18, %s1206_s5 }
0x1189   :  { %742 = vrot.lane.b32.xlu1 %v740_v14, %s1206_s5 }
0x1191   :  { %819 = vrot.lane.b32.xlu1 %v817_v49, %s1206_s5 }
0x11cb   :  { %v880_v27 = vpop.permute.xlu1 %879 }
0x11cc   :  { %v882_v52 = vmul.f32 %v880_v27, %v874_v28 }
0x11ce   :  { %884 = vrot.lane.b32.xlu2 %v882_v52, %s1206_s5 }
0x11d3   :  { %v355_v26 = vpop.permute.xlu1 %354 }
0x11d4   :  { %v357_v33 = vsel %vm206_vm2, %v355_v26, 0.0 }
0x11d5   :  { %358 = vadd.xlane.f32.xlu0 %v357_v33 }
0x11db   :  { %v435_v29 = vpop.permute.xlu1 %434 }
0x11dc   :  { %v437_v53 = vsel %vm206_vm2, %v435_v29, 0.0 }
0x11e3   :  { %v512_v34 = vpop.permute.xlu1 %511 }
0x11e4   :  { %v514_v30 = vsel %vm206_vm2, %v512_v34, 0.0 }
0x11e5   :  { %515 = vadd.xlane.f32.xlu0 %v514_v30 }
0x11eb   :  { %v589_v31 = vpop.permute.xlu1 %588 }
0x11ec   :  { %v591_v32 = vsel %vm206_vm2, %v589_v31, 0.0 }
0x11ed   :  { %592 = vadd.xlane.f32.xlu1 %v591_v32 }
0x11f3   :  { %v666_v35 = vpop.permute.xlu1 %665 }
0x11f4   :  { %v668_v36 = vsel %vm206_vm2, %v666_v35, 0.0 }
0x11f5   :  { %669 = vadd.xlane.f32.xlu0 %v668_v36 }
0x11fb   :  { %v743_v37 = vpop.permute.xlu1 %742 }
0x11fc   :  { %v745_v38 = vsel %vm206_vm2, %v743_v37, 0.0 }
0x11fd   :  { %746 = vadd.xlane.f32.xlu0 %v745_v38 }
0x1203   :  { %v820_v48 = vpop.permute.xlu1 %819 }
0x1204   :  { %v822_v0 = vsel %vm206_vm2, %v820_v48, 0.0 }
0x1228   :  { %v885_v40 = vpop.permute.xlu2 %884 }
0x1229   :  { %v887_v41 = vadd.f32 %v885_v40, %v877_v39 }
0x122b   :  { %1064 = vtanh.f32 %v887_v41 }
0x1231   :  { %v1065_v42 = vpop.eup %1064 }
0x1232   :  { %890 = vrot.lane.b32.xlu2 %v1065_v42, %s1205_s26 }
0x1248   :  { %v359_v46 = vpop.xlane.xlu0 %358 }
0x1249   :  { %v363_v47 = vperm.slane %v359_v46, %v362_v45 }
0x124b   :  { %366 = vst.msk [vmem:[#allocation3] sm:$0x1] %vm365_vm12, %v363_v47 }
0x1258   :  { %v516_v50 = vpop.xlane.xlu0 %515 }
0x1259   :  { %v518_v51 = vperm.slane %v516_v50, %v362_v45 }
0x125b   :  { %520 = vst.msk [vmem:[#allocation3 + $0x2] sm:$0x1] %vm365_vm12, %v518_v51  ;;  %438 = vadd.xlane.f32.xlu2 %v437_v53 }
0x1260   :  { %v593_v55 = vpop.xlane.xlu1 %592 }
0x1261   :  { %v595_v57 = vperm.slane %v593_v55, %v362_v45 }
0x1263   :  { %597 = vst.msk [vmem:[#allocation3 + $0x3] sm:$0x1] %vm365_vm12, %v595_v57 }
0x1268   :  { %v670_v54 = vpop.xlane.xlu0 %669 }
0x1269   :  { %v672_v58 = vperm.slane %v670_v54, %v362_v45 }
0x126b   :  { %674 = vst.msk [vmem:[#allocation3 + $0x4] sm:$0x1] %vm365_vm12, %v672_v58 }
0x1270   :  { %v747_v59 = vpop.xlane.xlu0 %746 }
0x1271   :  { %v749_v60 = vperm.slane %v747_v59, %v362_v45 }
0x1273   :  { %751 = vst.msk [vmem:[#allocation3 + $0x5] sm:$0x1] %vm365_vm12, %v749_v60 }
0x128c   :  { %v891_v61 = vpop.permute.xlu2 %890 }
0x128d   :  { %v893_v62 = vmul.f32 %v891_v61, %v874_v28 }
0x128f   :  { %v894_v63 = vmul.f32 %v893_v62, %v1401_v9  ;;  %v908_v9 = vstv %s1456_s7  ;;  %s938_s7 = sshll.u32 %s1457_s8, 4  ;;  %s939_s7 = int_to_ptr.hbm [resolvable:$true] %s938_s7 }
0x1291   :  { %896 = vrot.lane.b32.xlu2 %v894_v63, %s1206_s5 }
0x12ba   :  { %823 = vadd.xlane.f32.xlu2 %v822_v0 }
0x12ce   :  { %v439_v1 = vpop.xlane.xlu2 %438 }
0x12cf   :  { %v441_v2 = vperm.slane %v439_v1, %v362_v45 }
0x12d1   :  { %443 = vst.msk [vmem:[#allocation3 + $0x1] sm:$0x1] %vm365_vm12, %v441_v2 }
0x12eb   :  { %v897_v3 = vpop.permute.xlu2 %896 }
0x12ec   :  { %v899_v4 = vsel %vm206_vm2, %v897_v3, 0.0 }
0x12ed   :  { %900 = vadd.xlane.f32.xlu0 %v899_v4 }
0x132d   :  { %v824_v5 = vpop.xlane.xlu2 %823 }
0x132e   :  { %v826_v6 = vperm.slane %v824_v5, %v362_v45 }
0x1330   :  { %828 = vst.msk [vmem:[#allocation3 + $0x6] sm:$0x1] %vm365_vm12, %v826_v6 }
0x1360   :  { %v901_v7 = vpop.xlane.xlu0 %900 }
0x1361   :  { %v903_v8 = vperm.slane %v901_v7, %v362_v45 }
0x1363   :  { %905 = vst.msk [vmem:[#allocation3 + $0x7] sm:$0x1] %vm365_vm12, %v903_v8 }
0x136a   :  { %v906_v11 = vld [vmem:[#allocation3] sm:$0xff] }
0x136b   :  { %v909_v12 = vadd.f32 %v908_v9, %v906_v11 }
0x136d   :  { %v981_v13 = vmul.f32 -1.442695, %v909_v12 }
0x136f   :  { %1066 = vpow2.f32 %v981_v13 }
0x1375   :  { %v1067_v56 = vpop.eup %1066 }
0x1376   :  { %v913_v18 = vadd.f32 1.0, %v1067_v56 }
0x1378   :  { %1068 = vrcp.f32 %v913_v18  ;;  %v925_v16 = vand.u32 2147483648, %v913_v18  ;;  %v923_v43 = vand.u32 2147483647, %v913_v18  ;;  %vm919_vm13 = vweird.f32 %v913_v18 }
0x137a   :  { %v926_v20 = vor.u32 1.1754944e-38, %v925_v16  ;;  %vm924_vm0 = vcmp.eq.f32.partialorder %v923_v43, 8.507059e+37 }
0x137e   :  { %v1069_v14 = vpop.eup %1068 }
0x137f   :  { %v915_v49 = vmul.f32 %v1069_v14, %v913_v18  ;;  %vm920_vm2 = vweird.f32 %v1069_v14 }
0x1380   :  { %vm921_vm14 = vmor %vm919_vm13, %vm920_vm2 }
0x1381   :  { %v916_v15 = vsub.f32 1.0, %v915_v49 }
0x1383   :  { %v917_v17 = vmul.f32 %v1069_v14, %v916_v15 }
0x1385   :  { %v918_v19 = vadd.f32 %v1069_v14, %v917_v17 }
0x1387   :  { %v922_v21 = vsel %vm921_vm14, %v1069_v14, %v918_v19 }
0x1388   :  { %v927_v10 = vsel %vm924_vm0, %v926_v20, %v922_v21 }
0x1389   :  { %930 = vst.msk [vmem:[#allocation13] sm:$0xff] %vm929_vm15, %v927_v10 }
0x138a   :  { %941 = dma.vmem_to_hbm [thread:$0]  %s937_s10, 128, %s939_s7, [#allocation7]  }
0x138b   :  { %1196 = dma.done.wait [#allocation7], 128  }
0x138c   :  { %1197 = vsyncadd [#allocation7], 4294967168 }
0x138d   :  { %946 = vsyncpa [#allocation6], 1 }
0x138e   :  { %947 = vsyncpa [#allocation9], 1 }
0x138f   :  { %948 = vsyncpa [#allocation12], 1 }
0x1390   :  { %949 = vsyncpa [#allocation7], 1 }

</bundles_post_ra>
